<compile_context>
chip_gen: v7x
topology: tpu7x:2x2x1
jax: 0.10.0
libtpu: 0.0.40
codegen_flags: <defaults>
</compile_context>

<pallas_src>
import functools

import numpy as np
import jax
import jax.numpy as jnp
from jax import lax
from jax.experimental import pallas as pl
from jax.experimental.pallas import tpu as pltpu

DROPOUT_P = 0.2
_DROP_THRESHOLD = np.uint32(int(DROPOUT_P * (1 << 32)))  # drop if bits < threshold
_KEEP_SCALE = 1.0 / (1.0 - DROPOUT_P)


def _uniform_bits(seed_i32, row0, shape, n_cols):
    """Stateless per-element uint32 hash (lowbias32-style finalizer)."""
    # TODO(synk): RNG stream differs from torch's; Bernoulli(p) + 1/(1-p) scale
    # semantics match nn.Dropout(p).
    rows = lax.broadcasted_iota(jnp.int32, shape, 0) + row0
    cols = lax.broadcasted_iota(jnp.int32, shape, 1)
    idx = (rows * n_cols + cols).astype(jnp.uint32)
    x = idx ^ (seed_i32.astype(jnp.uint32) * jnp.uint32(0x9E3779B9))
    x = (x ^ (x >> 16)) * jnp.uint32(0x7FEB352D)
    x = (x ^ (x >> 15)) * jnp.uint32(0x846CA68B)
    return x ^ (x >> 16)


def ffn_kernel(seed_ref, x_ref, w1_ref, b1_ref, w2_ref, b2_ref, o_ref,
               *scratch, apply_dropout):
    # x_ref: (tm, D)   w1_ref: (D, th)  b1_ref: (1, th)
    # w2_ref: (th, D)  b2_ref: (1, D)   o_ref: (tm, D)
    # scratch: optional (tm, D) f32 accumulator (only when o_ref isn't f32).
    acc_ref = scratch[0] if scratch else o_ref

    # Hoisted out of the pl.when closures (interpret-mode safe).
    i = pl.program_id(0)
    j = pl.program_id(1)
    nj = pl.num_programs(1)

    @pl.when(j == 0)
    def _():
        acc_ref[...] = jnp.zeros(acc_ref.shape, acc_ref.dtype)

    # Linear(n_embed, 4*n_embed) restricted to this H-slice, + ReLU.
    # bf16 operands, f32 accumulation on the MXU.
    h = jnp.dot(x_ref[...], w1_ref[...],
                preferred_element_type=jnp.float32) + b1_ref[...]
    h = jnp.maximum(h, 0.0)

    # Partial Linear(4*n_embed, n_embed): accumulate this H-slice's contribution.
    acc_ref[...] += jnp.dot(h.astype(w2_ref.dtype), w2_ref[...],
                            preferred_element_type=jnp.float32
                            ).astype(acc_ref.dtype)

    @pl.when(j == nj - 1)
    def _():
        out = acc_ref[...].astype(jnp.float32) + b2_ref[...]
        if apply_dropout:
            tm_, d = out.shape
            row0 = i * tm_
            bits = _uniform_bits(seed_ref[0], row0, (tm_, d), d)
            keep = bits >= _DROP_THRESHOLD
            out = jnp.where(keep, out * _KEEP_SCALE, 0.0)
        o_ref[...] = out.astype(o_ref.dtype)


def _pick_block(n, target, mult):
    """Largest divisor of n that is <= target and a multiple of `mult`
    (falls back to n itself if no such divisor exists)."""
    target = min(target, n)
    if target >= n:
        return n
    d = (target // mult) * mult
    while d >= mult:
        if n % d == 0:
            return d
        d -= mult
    return n


def feed_forward(x2d, w1, b1, w2, b2, seed, *, tm=None, th=None, training=True,
                 compute_dtype=jnp.bfloat16, out_dtype=None):
    M, D = x2d.shape
    H = w1.shape[1]
    assert w1.shape == (D, H) and w2.shape == (H, D)
    out_dtype = jnp.dtype(x2d.dtype if out_dtype is None else out_dtype)

    cbytes = jnp.dtype(compute_dtype).itemsize
    obytes = out_dtype.itemsize

    # Clamp the VMEM budget to this chip (v5e/v6e: 128 MiB, v7x: 64 MiB/TC).
    try:
        phys_vmem = int(pltpu.get_tpu_info().vmem_capacity_bytes)
    except Exception:
        phys_vmem = 64 << 20  # conservative: smallest across v5e/v6e/v7x
    vmem_budget = min((phys_vmem * 3) // 4, 96 << 20)

    # f32 outputs accumulate directly into the resident output block.
    use_acc = out_dtype != jnp.dtype(jnp.float32)

    def vmem_needed(tm_, th_):
        return (2 * tm_ * D * cbytes            # x tiles (double buffered)
                + 2 * D * th_ * cbytes          # W1 column slice
                + 2 * th_ * D * cbytes          # W2 row slice
                + 2 * (th_ + D) * 4             # f32 bias slices
                + 2 * tm_ * D * obytes          # output tiles
                + (tm_ * D * 4 if use_acc else 0))

    # Hidden-dim slice: collapse H entirely when both weights fit (small-M /
    # small-model fast path), otherwise large slices to amortize per-step
    # overhead and accumulator RMW traffic.
    if th is None:
        if 2 * 2 * D * H * cbytes <= vmem_budget // 2:
            th = H
        else:
            th = 2048
    th = _pick_block(H, min(th, H), 128)

    # Row tile: arithmetic intensity == tm FLOP per HBM weight byte.
    if tm is None:
        tm = 1024 if vmem_budget >= (80 << 20) else 512
    tm = _pick_block(M, min(tm, M), 8)
    # Keep >= 2 row tiles (when they stay MXU-friendly) so the "parallel" row
    # axis can populate both TensorCores on v7x.
    if M // tm < 2:
        half = _pick_block(M, max(tm // 2, 8), 8)
        if half >= 256:
            tm = half

    # Shrink until the double-buffered working set fits this chip's VMEM.
    for _ in range(32):
        if vmem_needed(tm, th) <= vmem_budget:
            break
        if th > 512 and th // 2 >= 128:
            th = _pick_block(H, th // 2, 128)
        elif tm > 8 and tm // 2 >= 8:
            tm = _pick_block(M, tm // 2, 8)
        else:
            break

    assert M % tm == 0, (M, tm)
    assert H % th == 0, (H, th)
    grid = (M // tm, H // th)

    vmem_limit = int(min(max(vmem_needed(tm, th) + (4 << 20), 32 << 20),
                         phys_vmem - (4 << 20)))

    # Cast only when needed: pass pre-cast (bf16) weights to avoid a full-size
    # HBM cast pass on every call.
    xc = x2d if x2d.dtype == compute_dtype else x2d.astype(compute_dtype)
    w1c = w1 if w1.dtype == compute_dtype else w1.astype(compute_dtype)
    w2c = w2 if w2.dtype == compute_dtype else w2.astype(compute_dtype)
    b1f = b1 if b1.dtype == jnp.float32 else b1.astype(jnp.float32)
    b2f = b2 if b2.dtype == jnp.float32 else b2.astype(jnp.float32)

    kernel = functools.partial(ffn_kernel, apply_dropout=training)
    scratch_shapes = [pltpu.VMEM((tm, D), jnp.float32)] if use_acc else []

    return pl.pallas_call(
        kernel,
        out_shape=jax.ShapeDtypeStruct((M, D), out_dtype),
        grid_spec=pltpu.PrefetchScalarGridSpec(
            num_scalar_prefetch=1,                  # seed lands in SMEM
            grid=grid,                              # (row tiles, hidden slices)
            in_specs=[
                pl.BlockSpec((tm, D), lambda i, j, s: (i, 0)),   # x tile (reused over j)
                pl.BlockSpec((D, th), lambda i, j, s: (0, j)),   # W1 column slice
                pl.BlockSpec((1, th), lambda i, j, s: (0, j)),   # b1 slice
                pl.BlockSpec((th, D), lambda i, j, s: (j, 0)),   # W2 row slice
                pl.BlockSpec((1, D), lambda i, j, s: (0, 0)),    # b2
            ],
            out_specs=pl.BlockSpec((tm, D), lambda i, j, s: (i, 0)),
            scratch_shapes=scratch_shapes,
        ),
        compiler_params=pltpu.CompilerParams(
            # Stateless hash dropout -> no carried PRNG state, so rows are
            # safely parallel (uses both TCs on v7x); H is the reduction axis.
            dimension_semantics=("parallel", "arbitrary"),
            vmem_limit_bytes=vmem_limit,
        ),
    )(seed, xc, w1c, b1f, w2c, b2f)


def init_params(key, n_embed, dtype=jnp.float32):
    """Deterministic init matching nn.Linear's U(-1/sqrt(fan_in), 1/sqrt(fan_in))."""
    h = 4 * n_embed
    k1, k2, k3, k4 = jax.random.split(key, 4)
    lim1 = 1.0 / jnp.sqrt(n_embed)
    lim2 = 1.0 / jnp.sqrt(h)
    w1 = jax.random.uniform(k1, (n_embed, h), dtype, -lim1, lim1)   # (in, out)
    b1 = jax.random.uniform(k2, (1, h), dtype, -lim1, lim1)
    w2 = jax.random.uniform(k3, (h, n_embed), dtype, -lim2, lim2)   # (in, out)
    b2 = jax.random.uniform(k4, (1, n_embed), dtype, -lim2, lim2)
    return w1, b1, w2, b2


if __name__ == "__main__":
    # Small shapes consistent with the module: (batch, seq, n_embed), n_embed=384.
    B, T, N_EMBED = 2, 8, 384
    key = jax.random.PRNGKey(0)
    kx, kp = jax.random.split(key)

    x = jax.random.normal(kx, (B, T, N_EMBED), jnp.float32)
    w1, b1, w2, b2 = init_params(kp, N_EMBED)
    seed = jnp.array([0], dtype=jnp.int32)

    # Persist weights in the compute dtype (cast ONCE, not per call).
    w1b = w1.astype(jnp.bfloat16)
    w2b = w2.astype(jnp.bfloat16)

    x2d = x.reshape(B * T, N_EMBED)

    # Training forward (Dropout active), matching the PyTorch module's forward.
    out2d = feed_forward(x2d, w1b, b1, w2b, b2, seed, training=True)
    out = out2d.reshape(B, T, N_EMBED)
    jax.block_until_ready(out)
    assert out.shape == (B, T, N_EMBED) and out.dtype == jnp.float32

    # Sanity-check the matmul path (dropout off) against a pure-JAX reference
    # built from the same bf16 weights (isolates the activation-cast error).
    out_eval = feed_forward(x2d, w1b, b1, w2b, b2, seed, training=False)
    w1f, w2f = w1b.astype(jnp.float32), w2b.astype(jnp.float32)
    ref = jnp.maximum(x2d @ w1f + b1, 0.0) @ w2f + b2
    rel = float(jnp.linalg.norm(out_eval - ref) / (jnp.linalg.norm(ref) + 1e-6))
    assert rel < 5e-2, rel

    # Dropout zeroes roughly p = 0.2 of the outputs.
    frac_zero = float(jnp.mean(out2d == 0.0))
    assert 0.05 < frac_zero < 0.4, frac_zero

    print("KERNEL_OK")
</pallas_src>

<mosaic_0001>
module attributes {stable_mosaic.version = 11 : i64} {
  func.func @ffn_kernel(%arg0: i32, %arg1: i32, %arg2: memref<1xi32, #tpu.memory_space<smem>>, %arg3: memref<16x384xbf16, #tpu.memory_space<vmem>>, %arg4: memref<384x1536xbf16, #tpu.memory_space<vmem>>, %arg5: memref<1x1536xf32, #tpu.memory_space<vmem>>, %arg6: memref<1536x384xbf16, #tpu.memory_space<vmem>>, %arg7: memref<1x384xf32, #tpu.memory_space<vmem>>, %arg8: memref<16x384xf32, #tpu.memory_space<vmem>>) attributes {dimension_semantics = [#tpu.dimension_semantics<parallel>, #tpu.dimension_semantics<arbitrary>], iteration_bounds = array<i64: 1, 1>, scalar_prefetch = 1 : i64, scratch_operands = 0 : i64, tpu.core_type = #tpu.core_type<tc>, window_params = [{transform_indices = @transform_0, window_bounds = array<i64: 16, 384>}, {transform_indices = @transform_1, window_bounds = array<i64: 384, 1536>}, {transform_indices = @transform_2, window_bounds = array<i64: 1, 1536>}, {transform_indices = @transform_3, window_bounds = array<i64: 1536, 384>}, {pipeline_mode = #tpu.pipeline_mode<synchronous>, transform_indices = @transform_4, window_bounds = array<i64: 1, 384>}, {transform_indices = @transform_5, window_bounds = array<i64: 16, 384>}]} {
    %c0_i32 = arith.constant 0 : i32
    %0 = arith.cmpi eq, %arg1, %c0_i32 : i32
    %1 = arith.extui %0 : i1 to i32
    %c0_i32_0 = arith.constant 0 : i32
    %2 = arith.cmpi ne, %1, %c0_i32_0 : i32
    scf.if %2 {
      %cst_16 = arith.constant 0.000000e+00 : f32
      %20 = vector.broadcast %cst_16 : f32 to vector<16x384xf32>
      %c0_17 = arith.constant 0 : index
      %c0_18 = arith.constant 0 : index
      %21 = vector.load %arg8[%c0_17, %c0_18] : memref<16x384xf32, #tpu.memory_space<vmem>>, vector<16x384xf32>
      tpu.vector_store %arg8[%c0_17, %c0_18], %20 {strides = array<i32>} : memref<16x384xf32, #tpu.memory_space<vmem>>, vector<16x384xf32>,
    } else {
    }
    %c0 = arith.constant 0 : index
    %c0_1 = arith.constant 0 : index
    %3 = vector.load %arg3[%c0, %c0_1] : memref<16x384xbf16, #tpu.memory_space<vmem>>, vector<16x384xbf16>
    %c0_2 = arith.constant 0 : index
    %c0_3 = arith.constant 0 : index
    %4 = vector.load %arg4[%c0_2, %c0_3] : memref<384x1536xbf16, #tpu.memory_space<vmem>>, vector<384x1536xbf16>
    %cst = arith.constant dense<0.000000e+00> : vector<16x1536xf32>
    %5 = tpu.matmul %3, %4, %cst {dimension_numbers = #tpu.dot_dimension_numbers<[1], [0], [0], [1], [0, 0, 1, 1], [], []>} : vector<16x384xbf16>, vector<384x1536xbf16>, vector<16x1536xf32> -> vector<16x1536xf32>
    %c0_4 = arith.constant 0 : index
    %c0_5 = arith.constant 0 : index
    %6 = vector.load %arg5[%c0_4, %c0_5] : memref<1x1536xf32, #tpu.memory_space<vmem>>, vector<1x1536xf32>
    %7 = vector.broadcast %6 : vector<1x1536xf32> to vector<16x1536xf32>
    %8 = arith.addf %5, %7 : vector<16x1536xf32>
    %cst_6 = arith.constant 0.000000e+00 : f32
    %9 = vector.broadcast %cst_6 : f32 to vector<16x1536xf32>
    %10 = arith.maximumf %8, %9 : vector<16x1536xf32>
    %c0_7 = arith.constant 0 : index
    %c0_8 = arith.constant 0 : index
    %11 = vector.load %arg8[%c0_7, %c0_8] : memref<16x384xf32, #tpu.memory_space<vmem>>, vector<16x384xf32>
    %12 = arith.truncf %10 : vector<16x1536xf32> to vector<16x1536xbf16>
    %c0_9 = arith.constant 0 : index
    %c0_10 = arith.constant 0 : index
    %13 = vector.load %arg6[%c0_9, %c0_10] : memref<1536x384xbf16, #tpu.memory_space<vmem>>, vector<1536x384xbf16>
    %cst_11 = arith.constant dense<0.000000e+00> : vector<16x384xf32>
    %14 = tpu.matmul %12, %13, %cst_11 {dimension_numbers = #tpu.dot_dimension_numbers<[1], [0], [0], [1], [0, 0, 1, 1], [], []>} : vector<16x1536xbf16>, vector<1536x384xbf16>, vector<16x384xf32> -> vector<16x384xf32>
    %15 = arith.addf %11, %14 : vector<16x384xf32>
    %c0_12 = arith.constant 0 : index
    %c0_13 = arith.constant 0 : index
    %16 = vector.load %arg8[%c0_12, %c0_13] : memref<16x384xf32, #tpu.memory_space<vmem>>, vector<16x384xf32>
    tpu.vector_store %arg8[%c0_12, %c0_13], %15 {strides = array<i32>} : memref<16x384xf32, #tpu.memory_space<vmem>>, vector<16x384xf32>,
    %c0_i32_14 = arith.constant 0 : i32
    %17 = arith.cmpi eq, %arg1, %c0_i32_14 : i32
    %18 = arith.extui %17 : i1 to i32
    %c0_i32_15 = arith.constant 0 : i32
    %19 = arith.cmpi ne, %18, %c0_i32_15 : i32
    scf.if %19 {
      %c0_16 = arith.constant 0 : index
      %c0_17 = arith.constant 0 : index
      %20 = vector.load %arg8[%c0_16, %c0_17] : memref<16x384xf32, #tpu.memory_space<vmem>>, vector<16x384xf32>
      %c0_18 = arith.constant 0 : index
      %c0_19 = arith.constant 0 : index
      %21 = vector.load %arg7[%c0_18, %c0_19] : memref<1x384xf32, #tpu.memory_space<vmem>>, vector<1x384xf32>
      %22 = vector.broadcast %21 : vector<1x384xf32> to vector<16x384xf32>
      %23 = arith.addf %20, %22 : vector<16x384xf32>
      %c16_i32 = arith.constant 16 : i32
      %24 = arith.muli %arg0, %c16_i32 : i32
      %c0_20 = arith.constant 0 : index
      %25 = memref.load %arg2[%c0_20] : memref<1xi32, #tpu.memory_space<smem>>
      %26 = tpu.iota {dimensions = array<i32: 0>} : vector<16x384xi32>
      %27 = vector.broadcast %24 : i32 to vector<16x384xi32>
      %28 = arith.addi %26, %27 : vector<16x384xi32>
      %29 = tpu.iota {dimensions = array<i32: 1>} : vector<16x384xi32>
      %c384_i32 = arith.constant 384 : i32
      %30 = vector.broadcast %c384_i32 : i32 to vector<16x384xi32>
      %31 = arith.muli %28, %30 : vector<16x384xi32>
      %32 = arith.addi %31, %29 : vector<16x384xi32>
      %c-1640531527_i32 = arith.constant -1640531527 : i32
      %33 = arith.muli %25, %c-1640531527_i32 : i32
      %34 = vector.broadcast %33 : i32 to vector<16x384xi32>
      %35 = arith.xori %32, %34 : vector<16x384xi32>
      %c16_i32_21 = arith.constant 16 : i32
      %36 = vector.broadcast %c16_i32_21 : i32 to vector<16x384xi32>
      %37 = arith.shrui %35, %36 : vector<16x384xi32>
      %38 = arith.xori %35, %37 : vector<16x384xi32>
      %c2146121005_i32 = arith.constant 2146121005 : i32
      %39 = vector.broadcast %c2146121005_i32 : i32 to vector<16x384xi32>
      %40 = arith.muli %38, %39 : vector<16x384xi32>
      %c15_i32 = arith.constant 15 : i32
      %41 = vector.broadcast %c15_i32 : i32 to vector<16x384xi32>
      %42 = arith.shrui %40, %41 : vector<16x384xi32>
      %43 = arith.xori %40, %42 : vector<16x384xi32>
      %c-2073254261_i32 = arith.constant -2073254261 : i32
      %44 = vector.broadcast %c-2073254261_i32 : i32 to vector<16x384xi32>
      %45 = arith.muli %43, %44 : vector<16x384xi32>
      %c16_i32_22 = arith.constant 16 : i32
      %46 = vector.broadcast %c16_i32_22 : i32 to vector<16x384xi32>
      %47 = arith.shrui %45, %46 : vector<16x384xi32>
      %48 = arith.xori %45, %47 : vector<16x384xi32>
      %c858993459_i32 = arith.constant 858993459 : i32
      %49 = vector.broadcast %c858993459_i32 : i32 to vector<16x384xi32>
      %50 = arith.cmpi uge, %48, %49 : vector<16x384xi32>
      %cst_23 = arith.constant 1.250000e+00 : f32
      %51 = vector.broadcast %cst_23 : f32 to vector<16x384xf32>
      %52 = arith.mulf %23, %51 : vector<16x384xf32>
      %cst_24 = arith.constant 0.000000e+00 : f32
      %53 = vector.broadcast %cst_24 : f32 to vector<16x384xf32>
      %54 = arith.select %50, %52, %53 : vector<16x384xi1>, vector<16x384xf32>
      %c0_25 = arith.constant 0 : index
      %c0_26 = arith.constant 0 : index
      %55 = vector.load %arg8[%c0_25, %c0_26] : memref<16x384xf32, #tpu.memory_space<vmem>>, vector<16x384xf32>
      tpu.vector_store %arg8[%c0_25, %c0_26], %54 {strides = array<i32>} : memref<16x384xf32, #tpu.memory_space<vmem>>, vector<16x384xf32>,
    } else {
    }
    return
  }
  func.func @transform_0(%arg0: i32, %arg1: i32, %arg2: memref<1xi32, #tpu.memory_space<smem>>) -> (i32, i32) {
    %c0_i32 = arith.constant 0 : i32
    %c0_i32_0 = arith.constant 0 : i32
    return %arg0, %c0_i32 : i32, i32
  }
  func.func @transform_1(%arg0: i32, %arg1: i32, %arg2: memref<1xi32, #tpu.memory_space<smem>>) -> (i32, i32) {
    %c0_i32 = arith.constant 0 : i32
    %c0_i32_0 = arith.constant 0 : i32
    return %c0_i32, %arg1 : i32, i32
  }
  func.func @transform_2(%arg0: i32, %arg1: i32, %arg2: memref<1xi32, #tpu.memory_space<smem>>) -> (i32, i32) {
    %c0_i32 = arith.constant 0 : i32
    %c0_i32_0 = arith.constant 0 : i32
    return %c0_i32, %arg1 : i32, i32
  }
  func.func @transform_3(%arg0: i32, %arg1: i32, %arg2: memref<1xi32, #tpu.memory_space<smem>>) -> (i32, i32) {
    %c0_i32 = arith.constant 0 : i32
    %c0_i32_0 = arith.constant 0 : i32
    return %arg1, %c0_i32 : i32, i32
  }
  func.func @transform_4(%arg0: i32, %arg1: i32, %arg2: memref<1xi32, #tpu.memory_space<smem>>) -> (i32, i32) {
    %c0_i32 = arith.constant 0 : i32
    %c0_i32_0 = arith.constant 0 : i32
    %c0_i32_1 = arith.constant 0 : i32
    return %c0_i32, %c0_i32_0 : i32, i32
  }
  func.func @transform_5(%arg0: i32, %arg1: i32, %arg2: memref<1xi32, #tpu.memory_space<smem>>) -> (i32, i32) {
    %c0_i32 = arith.constant 0 : i32
    %c0_i32_0 = arith.constant 0 : i32
    return %arg0, %c0_i32 : i32, i32
  }
}

</mosaic_0001>

<bundles_post_ra>
// kernel: tpu_custom_call.1
= control target key start
LH: loop header
LB: loop body
LE: loop exit
PB: predicated region body
PF: predicated region fallthrough
CT: control target
= control target key end

     0   :  { %12 = vsyncpa [#allocation5], 0  ;;  %s7054_s0 = inlined_call_operand.<no memory space> [shape: s32[1], index: 0, kind: input, shape index: {}]   ;;  %s7055_s1 = inlined_call_operand.hbm [shape: bf16[16,384], index: 1, kind: input, shape index: {}]   ;;  %s7056_s2 = inlined_call_operand.hbm [shape: bf16[384,1536], index: 2, kind: input, shape index: {}]   ;;  %s7057_s3 = inlined_call_operand.hbm [shape: f32[1,1536], index: 3, kind: input, shape index: {}]   ;;  %s7058_s4 = inlined_call_operand.hbm [shape: bf16[1536,384], index: 4, kind: input, shape index: {}]   ;;  %s7059_s5 = inlined_call_operand.hbm [shape: f32[1,384], index: 5, kind: input, shape index: {}]   ;;  %s7060_s6 = inlined_call_operand.hbm [shape: f32[16,384], index: 6, kind: output, shape index: {}]  }
   0x1   :  { %13 = vsyncpa [#allocation8], 0 }
   0x2   :  { %14 = vsyncpa [#allocation11], 0 }
   0x3   :  { %15 = vsyncpa [#allocation6], 0  ;;  %s6812_s21 = smov [#allocation7]   ;;  %s6672_s25 = scalar_lea.hbm %s7056_s2, 36864 }
   0x4   :  { %s33_s22 = sshll.u32 %s6812_s21, 4  ;;  %p6673_p0 = scmp.ne.s32.totalorder %s7056_s2, %s6672_s25  ;;  %s34_s22 = int_to_ptr.vmem [resolvable:$true] %s33_s22 }
   0x5   :  { %p6676_p1 = scmp.lt.u32.totalorder %s6672_s25, %s7056_s2 }
   0x7   :  { %p6678_p2 = pnand %p6676_p1, %p6673_p0 }
   0x9   :  { %6681 = shalt.err (!%p6678_p2)
}
   0xa   :  { %s6682_s30 = scalar_lea.vmem %s34_s22, 36864  ;;  %p6687_p4 = scmp.lt.s32.totalorder %s34_s22, %s34_s22 }
   0xb   :  { %p6683_p3 = scmp.ne.s32.totalorder %s34_s22, %s6682_s30  ;;  %p6688_p5 = scmp.lt.s32.totalorder %s6682_s30, %s6682_s30 }
   0xd   :  { %p6689_p6 = por %p6688_p5, %p6687_p4 }
   0xf   :  { %p6690_p7 = pnand %p6689_p6, %p6683_p3 }
  0x11   :  { %6693 = shalt.err (!%p6690_p7)
}
  0x12   :  { %s6813_s7 = smov 768   ;;  %s6814_s8 = smov 48  }
  0x13   :  { %39 = dma.hbm_to_vmem [thread:$0]  %s7056_s2, 36864, %s34_s22, [#allocation8], %s6813_s7, %s6813_s7, %s6814_s8  }
  0x14   :  { %s6815_s11 = smov [#allocation10]   ;;  %s6816_s13 = smov [#allocation4]  }
  0x15   :  { %s55_s12 = sshll.u32 %s6815_s11, 4  ;;  %s21_s14 = sshll.u32 %s6816_s13, 4  ;;  %s56_s12 = int_to_ptr.vmem [resolvable:$true] %s55_s12  ;;  %s22_s14 = int_to_ptr.vmem [resolvable:$true] %s21_s14 }
  0x16   :  { %s6694_s17 = scalar_lea.hbm %s7058_s4, 36864 }
  0x17   :  { %p6695_p8 = scmp.ne.s32.totalorder %s7058_s4, %s6694_s17  ;;  %p6698_p9 = scmp.lt.u32.totalorder %s6694_s17, %s7058_s4 }
  0x19   :  { %p6700_p10 = pnand %p6698_p9, %p6695_p8 }
  0x1b   :  { %6703 = shalt.err (!%p6700_p10)
}
  0x1c   :  { %s6704_s2 = scalar_lea.vmem %s56_s12, 36864  ;;  %p6709_p12 = scmp.lt.s32.totalorder %s56_s12, %s56_s12 }
  0x1d   :  { %p6705_p11 = scmp.ne.s32.totalorder %s56_s12, %s6704_s2  ;;  %p6710_p13 = scmp.lt.s32.totalorder %s6704_s2, %s6704_s2 }
  0x1f   :  { %p6711_p0 = por %p6710_p13, %p6709_p12 }
  0x21   :  { %p6712_p1 = pnand %p6711_p0, %p6705_p11 }
  0x23   :  { %6715 = shalt.err (!%p6712_p1)
}
  0x24   :  { %s6817_s22 = smov 192   ;;  %s6818_s23 = smov 12  }
  0x25   :  { %61 = dma.hbm_to_vmem [thread:$0]  %s7058_s4, 36864, %s56_s12, [#allocation11], %s6817_s22, %s6817_s22, %s6818_s23  }
  0x26   :  { %s6716_s28 = scalar_lea.hbm %s7055_s1, 384 }
  0x27   :  { %p6717_p2 = scmp.ne.s32.totalorder %s7055_s1, %s6716_s28  ;;  %p6720_p3 = scmp.lt.u32.totalorder %s6716_s28, %s7055_s1 }
  0x29   :  { %p6722_p4 = pnand %p6720_p3, %p6717_p2 }
  0x2b   :  { %6725 = shalt.err (!%p6722_p4)
}
  0x2c   :  { %s6726_s9 = scalar_lea.vmem %s22_s14, 384  ;;  %p6731_p6 = scmp.lt.s32.totalorder %s22_s14, %s22_s14 }
  0x2d   :  { %p6727_p5 = scmp.ne.s32.totalorder %s22_s14, %s6726_s9  ;;  %p6732_p7 = scmp.lt.s32.totalorder %s6726_s9, %s6726_s9 }
  0x2f   :  { %p6733_p8 = por %p6732_p7, %p6731_p6 }
  0x31   :  { %p6734_p9 = pnand %p6733_p8, %p6727_p5 }
  0x33   :  { %6737 = shalt.err (!%p6734_p9)
}
  0x34   :  { %27 = dma.hbm_to_vmem [thread:$0]  %s7055_s1, 384, %s22_s14, [#allocation5], %s6817_s22, %s6817_s22, %s6818_s23  }
  0x35   :  { %s6819_s11 = smov [#allocation9]   ;;  %s6820_s13 = smov [#allocation12]  }
  0x36   :  { %s46_s12 = sshll.u32 %s6819_s11, 4  ;;  %s68_s15 = sshll.u32 %s6820_s13, 4  ;;  %s47_s12 = int_to_ptr.vmem [resolvable:$true] %s46_s12  ;;  %s69_s15 = int_to_ptr.vmem [resolvable:$true] %s68_s15 }
  0x37   :  { %s6738_s18 = scalar_lea.hbm %s7057_s3, 192 }
  0x38   :  { %p6739_p10 = scmp.ne.s32.totalorder %s7057_s3, %s6738_s18  ;;  %p6742_p11 = scmp.lt.u32.totalorder %s6738_s18, %s7057_s3 }
  0x3a   :  { %p6744_p12 = pnand %p6742_p11, %p6739_p10 }
  0x3c   :  { %6747 = shalt.err (!%p6744_p12)
}
  0x3d   :  { %s6748_s1 = scalar_lea.vmem %s47_s12, 192  ;;  %p6753_p0 = scmp.lt.s32.totalorder %s47_s12, %s47_s12 }
  0x3e   :  { %p6749_p13 = scmp.ne.s32.totalorder %s47_s12, %s6748_s1  ;;  %p6754_p1 = scmp.lt.s32.totalorder %s6748_s1, %s6748_s1 }
  0x40   :  { %p6755_p2 = por %p6754_p1, %p6753_p0 }
  0x42   :  { %p6756_p3 = pnand %p6755_p2, %p6749_p13 }
  0x44   :  { %6759 = shalt.err (!%p6756_p3)
}
  0x45   :  { %49 = dma.hbm_to_vmem [thread:$0]  %s7057_s3, 192, %s47_s12, [#allocation8]  }
  0x46   :  { %s6760_s25 = scalar_lea.hbm %s7059_s5, 48 }
  0x47   :  { %p6761_p4 = scmp.ne.s32.totalorder %s7059_s5, %s6760_s25  ;;  %p6764_p5 = scmp.lt.u32.totalorder %s6760_s25, %s7059_s5 }
  0x49   :  { %p6766_p6 = pnand %p6764_p5, %p6761_p4 }
  0x4b   :  { %6769 = shalt.err (!%p6766_p6)
}
  0x4c   :  { %s6770_s30 = scalar_lea.vmem %s69_s15, 48  ;;  %s6774_s7 = scalar_lea.vmem %s69_s15, 64 }
  0x4d   :  { %p6771_p7 = scmp.ne.s32.totalorder %s69_s15, %s6770_s30  ;;  %p6775_p8 = scmp.lt.s32.totalorder %s69_s15, %s69_s15 }
  0x4e   :  { %p6776_p9 = scmp.lt.s32.totalorder %s6774_s7, %s6770_s30 }
  0x50   :  { %p6777_p10 = por %p6776_p9, %p6775_p8 }
  0x52   :  { %p6778_p11 = pnand %p6777_p10, %p6771_p7 }
  0x54   :  { %6781 = shalt.err (!%p6778_p11)
}
  0x55   :  { %71 = dma.hbm_to_vmem [thread:$0]  %s7059_s5, 48, %s69_s15, [#allocation11]  }
  0x56   :  { %6804 = dma.done.wait [#allocation5], 384  }
  0x57   :  { %6805 = vsyncadd [#allocation5], 4294966912 }
  0x58   :  { %6806 = dma.done.wait [#allocation8], 37056  }
  0x59   :  { %6807 = vsyncadd [#allocation8], 4294930240 }
  0x5a   :  { %6808 = dma.done.wait [#allocation11], 36912  }
  0x5b   :  { %6809 = vsyncadd [#allocation11], 4294930384  ;;  %v5848_v0 = vld [vmem:[#allocation7 + $0x4] ss:$48 sps:$4 sm:$0xff]   ;;  %v5850_v1 = vld [vmem:[#allocation7] ss:$48 sps:$4 sm:$0xff]  }
  0x5c   :  { %1910 = vmatprep.subr.bf16.mxu1 %v5848_v0  ;;  %v5851_v2 = vld [vmem:[#allocation7 + $0x64] ss:$48 sps:$4 sm:$0xff]   ;;  %v5853_v3 = vld [vmem:[#allocation7 + $0x60] ss:$48 sps:$4 sm:$0xff]   ;;  %v6920_v18 = vld [vmem:[#allocation4 + $0x4] ss:$12 sps:$4 sm:$0xff]  }
  0x5d   :  { %1911 = vmatpush1.bf16.msra.mxu1 %v5850_v1  ;;  %v5854_v4 = vld [vmem:[#allocation7 + $0xc4] ss:$48 sps:$4 sm:$0xff]   ;;  %v5856_v5 = vld [vmem:[#allocation7 + $0xc0] ss:$48 sps:$4 sm:$0xff]   ;;  %1942 = vmatprep.mubr.bf16.mxu1 %v6920_v18  ;;  %v6821_v63 = vmov 0  }
  0x5e   :  { %1912 = vmatprep.subr.bf16.mxu1 %v5851_v2  ;;  %v5857_v6 = vld [vmem:[#allocation7 + $0x124] ss:$48 sps:$4 sm:$0xff]   ;;  %v5859_v7 = vld [vmem:[#allocation7 + $0x120] ss:$48 sps:$4 sm:$0xff]   ;;  %2114 = vmatprep.mubr.bf16.mxu0 %v6920_v18  ;;  %s4956_s4 = smul.u32 2654435769, %s7054_s0 }
  0x5f   :  { %v5860_v8 = vld [vmem:[#allocation7 + $0x184] ss:$48 sps:$4 sm:$0xff]   ;;  %v5862_v9 = vld [vmem:[#allocation7 + $0x180] ss:$48 sps:$4 sm:$0xff]   ;;  %s6822_s0 = smov [#allocation13]  }
  0x60   :  { %v5863_v10 = vld [vmem:[#allocation7 + $0x1e4] ss:$48 sps:$4 sm:$0xff]   ;;  %v5865_v11 = vld [vmem:[#allocation7 + $0x1e0] ss:$48 sps:$4 sm:$0xff]   ;;  %s5041_s10 = sshll.u32 %s6822_s0, 4  ;;  %s5042_s10 = int_to_ptr.vmem [resolvable:$true] %s5041_s10 }
  0x61   :  { %1913 = vmatpush1.bf16.msra.mxu1 %v5853_v3  ;;  %v5866_v12 = vld [vmem:[#allocation7 + $0x244] ss:$48 sps:$4 sm:$0xff]   ;;  %v5868_v14 = vld [vmem:[#allocation7 + $0x240] ss:$48 sps:$4 sm:$0xff]   ;;  %s6782_s11 = scalar_lea.vmem %s5042_s10, 768  ;;  %p6787_p13 = scmp.lt.s32.totalorder %s5042_s10, %s5042_s10 }
  0x62   :  { %1914 = vmatprep.subr.bf16.mxu1 %v5854_v4  ;;  %v5893_v13 = vld [vmem:[#allocation7 + $0x14] ss:$48 sps:$4 sm:$0xff]   ;;  %v5897_v16 = vld [vmem:[#allocation7 + $0x10] ss:$48 sps:$4 sm:$0xff]   ;;  %p6783_p12 = scmp.ne.s32.totalorder %s5042_s10, %s6782_s11  ;;  %p6788_p0 = scmp.lt.s32.totalorder %s6782_s11, %s6782_s11 }
  0x63   :  { %v5869_v15 = vld [vmem:[#allocation7 + $0x2a4] ss:$48 sps:$4 sm:$0xff]   ;;  %2082 = vmatprep.subr.bf16.mxu0 %v5893_v13  ;;  %v5871_v19 = vld [vmem:[#allocation7 + $0x2a0] ss:$48 sps:$4 sm:$0xff]  }
  0x64   :  { %v5899_v17 = vld [vmem:[#allocation7 + $0x74] ss:$48 sps:$4 sm:$0xff]   ;;  %2083 = vmatpush1.bf16.msra.mxu0 %v5897_v16  ;;  %v5906_v20 = vld [vmem:[#allocation7 + $0x70] ss:$48 sps:$4 sm:$0xff]   ;;  %p6789_p1 = por %p6788_p0, %p6787_p13 }
  0x65   :  { %1915 = vmatpush1.bf16.msra.mxu1 %v5856_v5  ;;  %2084 = vmatprep.subr.bf16.mxu0 %v5899_v17  ;;  %v5908_v21 = vld [vmem:[#allocation7 + $0xd4] ss:$48 sps:$4 sm:$0xff]   ;;  %v5913_v23 = vld [vmem:[#allocation7 + $0xd0] ss:$48 sps:$4 sm:$0xff]  }
  0x66   :  { %1916 = vmatprep.subr.bf16.mxu1 %v5857_v6  ;;  %v5872_v22 = vld [vmem:[#allocation7 + $0x304] ss:$48 sps:$4 sm:$0xff]   ;;  %v5874_v25 = vld [vmem:[#allocation7 + $0x300] ss:$48 sps:$4 sm:$0xff]   ;;  %p6790_p2 = pnand %p6789_p1, %p6783_p12 }
  0x67   :  { %v5914_v24 = vld [vmem:[#allocation7 + $0x134] ss:$48 sps:$4 sm:$0xff]   ;;  %v5919_v27 = vld [vmem:[#allocation7 + $0x130] ss:$48 sps:$4 sm:$0xff]  }
  0x68   :  { %2085 = vmatpush1.bf16.msra.mxu0 %v5906_v20  ;;  %v5875_v26 = vld [vmem:[#allocation7 + $0x364] ss:$48 sps:$4 sm:$0xff]   ;;  %v5877_v29 = vld [vmem:[#allocation7 + $0x360] ss:$48 sps:$4 sm:$0xff]  }
  0x69   :  { %1917 = vmatpush1.bf16.msra.mxu1 %v5859_v7  ;;  %2086 = vmatprep.subr.bf16.mxu0 %v5908_v21  ;;  %v5920_v28 = vld [vmem:[#allocation7 + $0x194] ss:$48 sps:$4 sm:$0xff]   ;;  %v5925_v31 = vld [vmem:[#allocation7 + $0x190] ss:$48 sps:$4 sm:$0xff]  }
  0x6a   :  { %1918 = vmatprep.subr.bf16.mxu1 %v5860_v8  ;;  %v5878_v30 = vld [vmem:[#allocation7 + $0x3c4] ss:$48 sps:$4 sm:$0xff]   ;;  %v5880_v33 = vld [vmem:[#allocation7 + $0x3c0] ss:$48 sps:$4 sm:$0xff]  }
  0x6b   :  { %v5926_v32 = vld [vmem:[#allocation7 + $0x1f4] ss:$48 sps:$4 sm:$0xff]   ;;  %v5931_v35 = vld [vmem:[#allocation7 + $0x1f0] ss:$48 sps:$4 sm:$0xff]  }
  0x6c   :  { %2087 = vmatpush1.bf16.msra.mxu0 %v5913_v23  ;;  %v5881_v34 = vld [vmem:[#allocation7 + $0x424] ss:$48 sps:$4 sm:$0xff]   ;;  %v5883_v37 = vld [vmem:[#allocation7 + $0x420] ss:$48 sps:$4 sm:$0xff]  }
  0x6d   :  { %1919 = vmatpush1.bf16.msra.mxu1 %v5862_v9  ;;  %2088 = vmatprep.subr.bf16.mxu0 %v5914_v24  ;;  %v5932_v36 = vld [vmem:[#allocation7 + $0x254] ss:$48 sps:$4 sm:$0xff]   ;;  %v5937_v39 = vld [vmem:[#allocation7 + $0x250] ss:$48 sps:$4 sm:$0xff]  }
  0x6e   :  { %1920 = vmatprep.subr.bf16.mxu1 %v5863_v10  ;;  %v5884_v38 = vld [vmem:[#allocation7 + $0x484] ss:$48 sps:$4 sm:$0xff]   ;;  %v5886_v41 = vld [vmem:[#allocation7 + $0x480] ss:$48 sps:$4 sm:$0xff]  }
  0x6f   :  { %v5938_v40 = vld [vmem:[#allocation7 + $0x2b4] ss:$48 sps:$4 sm:$0xff]   ;;  %v5943_v43 = vld [vmem:[#allocation7 + $0x2b0] ss:$48 sps:$4 sm:$0xff]  }
  0x70   :  { %2089 = vmatpush1.bf16.msra.mxu0 %v5919_v27  ;;  %v5887_v42 = vld [vmem:[#allocation7 + $0x4e4] ss:$48 sps:$4 sm:$0xff]   ;;  %v5889_v45 = vld [vmem:[#allocation7 + $0x4e0] ss:$48 sps:$4 sm:$0xff]  }
  0x71   :  { %1921 = vmatpush1.bf16.msra.mxu1 %v5865_v11  ;;  %2090 = vmatprep.subr.bf16.mxu0 %v5920_v28  ;;  %v5944_v44 = vld [vmem:[#allocation7 + $0x314] ss:$48 sps:$4 sm:$0xff]   ;;  %v5949_v47 = vld [vmem:[#allocation7 + $0x310] ss:$48 sps:$4 sm:$0xff]  }
  0x72   :  { %1922 = vmatprep.subr.bf16.mxu1 %v5866_v12  ;;  %v5890_v46 = vld [vmem:[#allocation7 + $0x544] ss:$48 sps:$4 sm:$0xff]   ;;  %v5892_v49 = vld [vmem:[#allocation7 + $0x540] ss:$48 sps:$4 sm:$0xff]  }
  0x73   :  { %v5950_v48 = vld [vmem:[#allocation7 + $0x374] ss:$48 sps:$4 sm:$0xff]   ;;  %v5956_v51 = vld [vmem:[#allocation7 + $0x370] ss:$48 sps:$4 sm:$0xff]  }
  0x74   :  { %2091 = vmatpush1.bf16.msra.mxu0 %v5925_v31  ;;  %v5895_v50 = vld [vmem:[#allocation7 + $0x5a4] ss:$48 sps:$4 sm:$0xff]   ;;  %v5898_v53 = vld [vmem:[#allocation7 + $0x5a0] ss:$48 sps:$4 sm:$0xff]  }
  0x75   :  { %1923 = vmatpush1.bf16.msra.mxu1 %v5868_v14  ;;  %2092 = vmatprep.subr.bf16.mxu0 %v5926_v32  ;;  %v5957_v52 = vld [vmem:[#allocation7 + $0x3d4] ss:$48 sps:$4 sm:$0xff]   ;;  %v5962_v55 = vld [vmem:[#allocation7 + $0x3d0] ss:$48 sps:$4 sm:$0xff]  }
  0x76   :  { %1924 = vmatprep.subr.bf16.mxu1 %v5869_v15  ;;  %v5905_v54 = vld [vmem:[#allocation7 + $0x604] ss:$48 sps:$4 sm:$0xff]   ;;  %v5903_v58 = vld [vmem:[#allocation7 + $0x600] ss:$48 sps:$4 sm:$0xff]  }
  0x77   :  { %v5963_v56 = vld [vmem:[#allocation7 + $0x434] ss:$48 sps:$4 sm:$0xff]   ;;  %v5968_v60 = vld [vmem:[#allocation7 + $0x430] ss:$48 sps:$4 sm:$0xff]  }
  0x78   :  { %2093 = vmatpush1.bf16.msra.mxu0 %v5931_v35  ;;  %v6924_v57 = vld [vmem:[#allocation4] ss:$12 sps:$4 sm:$0xff]   ;;  %v5910_v62 = vld [vmem:[#allocation7 + $0x660] ss:$48 sps:$4 sm:$0xff]  }
  0x79   :  { %1925 = vmatpush1.bf16.msra.mxu1 %v5871_v19  ;;  %2094 = vmatprep.subr.bf16.mxu0 %v5932_v36  ;;  %v5912_v59 = vld [vmem:[#allocation7 + $0x664] ss:$48 sps:$4 sm:$0xff]   ;;  %v5974_v1 = vld [vmem:[#allocation7 + $0x490] ss:$48 sps:$4 sm:$0xff]  }
  0x7a   :  { %1926 = vmatprep.subr.bf16.mxu1 %v5872_v22  ;;  %v5969_v61 = vld [vmem:[#allocation7 + $0x494] ss:$48 sps:$4 sm:$0xff]   ;;  %v5916_v3 = vld [vmem:[#allocation7 + $0x6c0] ss:$48 sps:$4 sm:$0xff]  }
  0x7b   :  { %v5918_v0 = vld [vmem:[#allocation7 + $0x6c4] ss:$48 sps:$4 sm:$0xff]   ;;  %v5980_v5 = vld [vmem:[#allocation7 + $0x4f0] ss:$48 sps:$4 sm:$0xff]  }
  0x7c   :  { %2095 = vmatpush1.bf16.msra.mxu0 %v5937_v39  ;;  %v5975_v2 = vld [vmem:[#allocation7 + $0x4f4] ss:$48 sps:$4 sm:$0xff]   ;;  %v5922_v7 = vld [vmem:[#allocation7 + $0x720] ss:$48 sps:$4 sm:$0xff]  }
  0x7d   :  { %1927 = vmatpush1.bf16.msra.mxu1 %v5874_v25  ;;  %2096 = vmatprep.subr.bf16.mxu0 %v5938_v40  ;;  %v5924_v4 = vld [vmem:[#allocation7 + $0x724] ss:$48 sps:$4 sm:$0xff]   ;;  %v5986_v9 = vld [vmem:[#allocation7 + $0x550] ss:$48 sps:$4 sm:$0xff]   ;;  %v5955_v25 = vld [vmem:[#allocation7 + $0xc] ss:$48 sps:$4 sm:$0xff]  }
  0x7e   :  { %1928 = vmatprep.subr.bf16.mxu1 %v5875_v26  ;;  %v5981_v6 = vld [vmem:[#allocation7 + $0x554] ss:$48 sps:$4 sm:$0xff]   ;;  %v5928_v11 = vld [vmem:[#allocation7 + $0x780] ss:$48 sps:$4 sm:$0xff]  }
  0x7f   :  { %v5930_v8 = vld [vmem:[#allocation7 + $0x784] ss:$48 sps:$4 sm:$0xff]   ;;  %v5992_v13 = vld [vmem:[#allocation7 + $0x5b0] ss:$48 sps:$4 sm:$0xff]  }
  0x80   :  { %2097 = vmatpush1.bf16.msra.mxu0 %v5943_v43  ;;  %v5987_v10 = vld [vmem:[#allocation7 + $0x5b4] ss:$48 sps:$4 sm:$0xff]   ;;  %v5934_v15 = vld [vmem:[#allocation7 + $0x7e0] ss:$48 sps:$4 sm:$0xff]  }
  0x81   :  { %1929 = vmatpush1.bf16.msra.mxu1 %v5877_v29  ;;  %2098 = vmatprep.subr.bf16.mxu0 %v5944_v44  ;;  %v5936_v12 = vld [vmem:[#allocation7 + $0x7e4] ss:$48 sps:$4 sm:$0xff]   ;;  %v5993_v17 = vld [vmem:[#allocation7 + $0x610] ss:$48 sps:$4 sm:$0xff]   ;;  %v5953_v29 = vld [vmem:[#allocation7 + $0x8] ss:$48 sps:$4 sm:$0xff]  }
  0x82   :  { %1930 = vmatprep.subr.bf16.mxu1 %v5878_v30  ;;  %v5995_v14 = vld [vmem:[#allocation7 + $0x614] ss:$48 sps:$4 sm:$0xff]   ;;  %v5940_v20 = vld [vmem:[#allocation7 + $0x840] ss:$48 sps:$4 sm:$0xff]   ;;  %v5961_v30 = vld [vmem:[#allocation7 + $0x6c] ss:$48 sps:$4 sm:$0xff]  }
  0x83   :  { %v5942_v16 = vld [vmem:[#allocation7 + $0x844] ss:$48 sps:$4 sm:$0xff]   ;;  %v5999_v22 = vld [vmem:[#allocation7 + $0x670] ss:$48 sps:$4 sm:$0xff]  }
  0x84   :  { %2099 = vmatpush1.bf16.msra.mxu0 %v5949_v47  ;;  %v6001_v19 = vld [vmem:[#allocation7 + $0x674] ss:$48 sps:$4 sm:$0xff]   ;;  %v5946_v24 = vld [vmem:[#allocation7 + $0x8a0] ss:$48 sps:$4 sm:$0xff]  }
  0x85   :  { %1931 = vmatpush1.bf16.msra.mxu1 %v5880_v33  ;;  %2100 = vmatprep.subr.bf16.mxu0 %v5950_v48  ;;  %v5948_v21 = vld [vmem:[#allocation7 + $0x8a4] ss:$48 sps:$4 sm:$0xff]   ;;  %v6005_v26 = vld [vmem:[#allocation7 + $0x6d0] ss:$48 sps:$4 sm:$0xff]   ;;  %v5959_v33 = vld [vmem:[#allocation7 + $0x68] ss:$48 sps:$4 sm:$0xff]  }
  0x86   :  { %1932 = vmatprep.subr.bf16.mxu1 %v5881_v34  ;;  %v6007_v23 = vld [vmem:[#allocation7 + $0x6d4] ss:$48 sps:$4 sm:$0xff]   ;;  %v6930_v28 = vld [vmem:[#allocation4 + $0x8] ss:$12 sps:$4 sm:$0xff]  }
  0x87   :  { %v6013_v27 = vld [vmem:[#allocation7 + $0x734] ss:$48 sps:$4 sm:$0xff]   ;;  %v6011_v31 = vld [vmem:[#allocation7 + $0x730] ss:$48 sps:$4 sm:$0xff]   ;;  %v5967_v34 = vld [vmem:[#allocation7 + $0xcc] ss:$48 sps:$4 sm:$0xff]  }
  0x88   :  { %2101 = vmatpush1.bf16.msra.mxu0 %v5956_v51  ;;  %v6019_v32 = vld [vmem:[#allocation7 + $0x794] ss:$48 sps:$4 sm:$0xff]   ;;  %v6017_v35 = vld [vmem:[#allocation7 + $0x790] ss:$48 sps:$4 sm:$0xff]  }
  0x89   :  { %1933 = vmatpush1.bf16.msra.mxu1 %v5883_v37  ;;  %2102 = vmatprep.subr.bf16.mxu0 %v5957_v52  ;;  %v6025_v36 = vld [vmem:[#allocation7 + $0x7f4] ss:$48 sps:$4 sm:$0xff]   ;;  %v5965_v37 = vld [vmem:[#allocation7 + $0xc8] ss:$48 sps:$4 sm:$0xff]   ;;  %v6023_v39 = vld [vmem:[#allocation7 + $0x7f0] ss:$48 sps:$4 sm:$0xff]  }
  0x8a   :  { %1934 = vmatprep.subr.bf16.mxu1 %v5884_v38  ;;  %v5973_v38 = vld [vmem:[#allocation7 + $0x12c] ss:$48 sps:$4 sm:$0xff]   ;;  %v6031_v40 = vld [vmem:[#allocation7 + $0x854] ss:$48 sps:$4 sm:$0xff]   ;;  %v6029_v43 = vld [vmem:[#allocation7 + $0x850] ss:$48 sps:$4 sm:$0xff]  }
  0x8b   :  { %v6037_v44 = vld [vmem:[#allocation7 + $0x8b4] ss:$48 sps:$4 sm:$0xff]   ;;  %v6035_v47 = vld [vmem:[#allocation7 + $0x8b0] ss:$48 sps:$4 sm:$0xff]  }
  0x8c   :  { %2103 = vmatpush1.bf16.msra.mxu0 %v5962_v55  ;;  %v6043_v48 = vld [vmem:[#allocation7 + $0x24] ss:$48 sps:$4 sm:$0xff]   ;;  %v6041_v51 = vld [vmem:[#allocation7 + $0x20] ss:$48 sps:$4 sm:$0xff]  }
  0x8d   :  { %1935 = vmatpush1.bf16.msra.mxu1 %v5886_v41  ;;  %2104 = vmatprep.subr.bf16.mxu0 %v5963_v56  ;;  %v5971_v41 = vld [vmem:[#allocation7 + $0x128] ss:$48 sps:$4 sm:$0xff]   ;;  %v6049_v52 = vld [vmem:[#allocation7 + $0x84] ss:$48 sps:$4 sm:$0xff]   ;;  %v6047_v55 = vld [vmem:[#allocation7 + $0x80] ss:$48 sps:$4 sm:$0xff]  }
  0x8e   :  { %1936 = vmatprep.subr.bf16.mxu1 %v5887_v42  ;;  %v5979_v42 = vld [vmem:[#allocation7 + $0x18c] ss:$48 sps:$4 sm:$0xff]   ;;  %v6055_v56 = vld [vmem:[#allocation7 + $0xe4] ss:$48 sps:$4 sm:$0xff]  }
  0x90   :  { %2105 = vmatpush1.bf16.msra.mxu0 %v5968_v60  ;;  %v6053_v60 = vld [vmem:[#allocation7 + $0xe0] ss:$48 sps:$4 sm:$0xff]  }
  0x91   :  { %1937 = vmatpush1.bf16.msra.mxu1 %v5889_v45  ;;  %2106 = vmatprep.subr.bf16.mxu0 %v5969_v61  ;;  %v5977_v45 = vld [vmem:[#allocation7 + $0x188] ss:$48 sps:$4 sm:$0xff]   ;;  %v6061_v61 = vld [vmem:[#allocation7 + $0x144] ss:$48 sps:$4 sm:$0xff]  }
  0x92   :  { %1938 = vmatprep.subr.bf16.mxu1 %v5890_v46  ;;  %v5985_v46 = vld [vmem:[#allocation7 + $0x1ec] ss:$48 sps:$4 sm:$0xff]  }
  0x94   :  { %2107 = vmatpush1.bf16.msra.mxu0 %v5974_v1  ;;  %v6059_v1 = vld [vmem:[#allocation7 + $0x140] ss:$48 sps:$4 sm:$0xff]  }
  0x95   :  { %1939 = vmatpush1.bf16.msra.mxu1 %v5892_v49  ;;  %2108 = vmatprep.subr.bf16.mxu0 %v5975_v2  ;;  %v5983_v49 = vld [vmem:[#allocation7 + $0x1e8] ss:$48 sps:$4 sm:$0xff]   ;;  %v6067_v2 = vld [vmem:[#allocation7 + $0x1a4] ss:$48 sps:$4 sm:$0xff]  }
  0x96   :  { %1940 = vmatprep.subr.bf16.mxu1 %v5895_v50  ;;  %v5991_v50 = vld [vmem:[#allocation7 + $0x24c] ss:$48 sps:$4 sm:$0xff]  }
  0x98   :  { %2109 = vmatpush1.bf16.msra.mxu0 %v5980_v5  ;;  %v6073_v5 = vld [vmem:[#allocation7 + $0x204] ss:$48 sps:$4 sm:$0xff]  }
  0x99   :  { %1941 = vmatpush1.bf16.msra.mxu1 %v5898_v53  ;;  %2110 = vmatprep.subr.bf16.mxu0 %v5981_v6  ;;  %v5989_v53 = vld [vmem:[#allocation7 + $0x248] ss:$48 sps:$4 sm:$0xff]  }
  0x9a   :  { %1953 = vmatprep.subr.bf16.mxu1 %v5905_v54  ;;  %v5998_v54 = vld [vmem:[#allocation7 + $0x2ac] ss:$48 sps:$4 sm:$0xff]   ;;  %v6014_v6 = vld [vmem:[#allocation7 + $0x3c8] ss:$48 sps:$4 sm:$0xff]  }
  0x9c   :  { %1943 = vmatmul.mubr.bf16.vlgmr.msra.gmra.mrb[0].mxu1 %v6924_v57  ;;  %2111 = vmatpush1.bf16.msra.mxu0 %v5986_v9  ;;  %v6079_v9 = vld [vmem:[#allocation7 + $0x264] ss:$48 sps:$4 sm:$0xff]  }
  0x9d   :  { %1954 = vmatpush1.bf16.msra.mxu1 %v5903_v58  ;;  %1985 = vmatprep.mubr.bf16.mxu1 %v6821_v63  ;;  %v5996_v58 = vld [vmem:[#allocation7 + $0x2a8] ss:$48 sps:$4 sm:$0xff]  }
  0x9e   :  { %1955 = vmatprep.subr.bf16.mxu1 %v5912_v59  ;;  %2112 = vmatprep.subr.bf16.mxu0 %v5987_v10  ;;  %v6004_v59 = vld [vmem:[#allocation7 + $0x30c] ss:$48 sps:$4 sm:$0xff]   ;;  %v6020_v10 = vld [vmem:[#allocation7 + $0x428] ss:$48 sps:$4 sm:$0xff]  }
  0xa0   :  { %2113 = vmatpush1.bf16.msra.mxu0 %v5992_v13  ;;  %v6085_v13 = vld [vmem:[#allocation7 + $0x2c4] ss:$48 sps:$4 sm:$0xff]  }
  0xa1   :  { %1956 = vmatpush1.bf16.msra.mxu1 %v5910_v62  ;;  %2125 = vmatprep.subr.bf16.mxu0 %v5995_v14  ;;  %v6002_v62 = vld [vmem:[#allocation7 + $0x308] ss:$48 sps:$4 sm:$0xff]  }
  0xa2   :  { %1957 = vmatprep.subr.bf16.mxu1 %v5918_v0  ;;  %v6010_v0 = vld [vmem:[#allocation7 + $0x36c] ss:$48 sps:$4 sm:$0xff]   ;;  %v6026_v14 = vld [vmem:[#allocation7 + $0x488] ss:$48 sps:$4 sm:$0xff]  }
  0xa3   :  { %2115 = vmatmul.mubr.bf16.vlgmr.msra.gmra.mrb[0].mxu0 %v6924_v57 }
  0xa4   :  { %2126 = vmatpush1.bf16.msra.mxu0 %v5993_v17  ;;  %2157 = vmatprep.mubr.bf16.mxu0 %v6821_v63  ;;  %v6091_v17 = vld [vmem:[#allocation7 + $0x324] ss:$48 sps:$4 sm:$0xff]  }
  0xa5   :  { %1958 = vmatpush1.bf16.msra.mxu1 %v5916_v3  ;;  %2127 = vmatprep.subr.bf16.mxu0 %v6001_v19  ;;  %v6008_v3 = vld [vmem:[#allocation7 + $0x368] ss:$48 sps:$4 sm:$0xff]  }
  0xa6   :  { %1959 = vmatprep.subr.bf16.mxu1 %v5924_v4  ;;  %v6065_v4 = vld [vmem:[#allocation7 + $0x1a0] ss:$48 sps:$4 sm:$0xff]   ;;  %v6032_v19 = vld [vmem:[#allocation7 + $0x4e8] ss:$48 sps:$4 sm:$0xff]  }
  0xa8   :  { %2128 = vmatpush1.bf16.msra.mxu0 %v5999_v22  ;;  %v6097_v22 = vld [vmem:[#allocation7 + $0x384] ss:$48 sps:$4 sm:$0xff]  }
  0xa9   :  { %1960 = vmatpush1.bf16.msra.mxu1 %v5922_v7  ;;  %2129 = vmatprep.subr.bf16.mxu0 %v6007_v23  ;;  %v6022_v7 = vld [vmem:[#allocation7 + $0x42c] ss:$48 sps:$4 sm:$0xff]   ;;  %v6038_v23 = vld [vmem:[#allocation7 + $0x548] ss:$48 sps:$4 sm:$0xff]  }
  0xaa   :  { %1961 = vmatprep.subr.bf16.mxu1 %v5930_v8  ;;  %v6071_v8 = vld [vmem:[#allocation7 + $0x200] ss:$48 sps:$4 sm:$0xff]  }
  0xac   :  { %2130 = vmatpush1.bf16.msra.mxu0 %v6005_v26  ;;  %v6103_v26 = vld [vmem:[#allocation7 + $0x3e4] ss:$48 sps:$4 sm:$0xff]  }
  0xad   :  { %1962 = vmatpush1.bf16.msra.mxu1 %v5928_v11  ;;  %2131 = vmatprep.subr.bf16.mxu0 %v6013_v27  ;;  %v6028_v11 = vld [vmem:[#allocation7 + $0x48c] ss:$48 sps:$4 sm:$0xff]   ;;  %v6044_v27 = vld [vmem:[#allocation7 + $0x5a8] ss:$48 sps:$4 sm:$0xff]  }
  0xae   :  { %1963 = vmatprep.subr.bf16.mxu1 %v5936_v12  ;;  %v6077_v12 = vld [vmem:[#allocation7 + $0x260] ss:$48 sps:$4 sm:$0xff]  }
  0xb0   :  { %2132 = vmatpush1.bf16.msra.mxu0 %v6011_v31  ;;  %v6109_v31 = vld [vmem:[#allocation7 + $0x444] ss:$48 sps:$4 sm:$0xff]  }
  0xb1   :  { %1964 = vmatpush1.bf16.msra.mxu1 %v5934_v15  ;;  %2133 = vmatprep.subr.bf16.mxu0 %v6019_v32  ;;  %v6034_v15 = vld [vmem:[#allocation7 + $0x4ec] ss:$48 sps:$4 sm:$0xff]   ;;  %v6050_v32 = vld [vmem:[#allocation7 + $0x608] ss:$48 sps:$4 sm:$0xff]  }
  0xb2   :  { %1965 = vmatprep.subr.bf16.mxu1 %v5942_v16  ;;  %v6083_v16 = vld [vmem:[#allocation7 + $0x2c0] ss:$48 sps:$4 sm:$0xff]  }
  0xb4   :  { %2134 = vmatpush1.bf16.msra.mxu0 %v6017_v35  ;;  %v6115_v35 = vld [vmem:[#allocation7 + $0x4a4] ss:$48 sps:$4 sm:$0xff]  }
  0xb5   :  { %1966 = vmatpush1.bf16.msra.mxu1 %v5940_v20  ;;  %2135 = vmatprep.subr.bf16.mxu0 %v6025_v36  ;;  %v6040_v20 = vld [vmem:[#allocation7 + $0x54c] ss:$48 sps:$4 sm:$0xff]   ;;  %v6056_v36 = vld [vmem:[#allocation7 + $0x668] ss:$48 sps:$4 sm:$0xff]  }
  0xb6   :  { %1967 = vmatprep.subr.bf16.mxu1 %v5948_v21  ;;  %v6089_v21 = vld [vmem:[#allocation7 + $0x320] ss:$48 sps:$4 sm:$0xff]  }
  0xb8   :  { %2136 = vmatpush1.bf16.msra.mxu0 %v6023_v39  ;;  %v6121_v39 = vld [vmem:[#allocation7 + $0x504] ss:$48 sps:$4 sm:$0xff]  }
  0xb9   :  { %1968 = vmatpush1.bf16.msra.mxu1 %v5946_v24  ;;  %2137 = vmatprep.subr.bf16.mxu0 %v6031_v40  ;;  %v6046_v24 = vld [vmem:[#allocation7 + $0x5ac] ss:$48 sps:$4 sm:$0xff]   ;;  %v6062_v40 = vld [vmem:[#allocation7 + $0x6c8] ss:$48 sps:$4 sm:$0xff]  }
  0xba   :  { %1996 = vmatprep.subr.bf16.mxu1 %v5955_v25  ;;  %v6095_v25 = vld [vmem:[#allocation7 + $0x380] ss:$48 sps:$4 sm:$0xff]  }
  0xbc   :  { %1986 = vmatmul.mubr.bf16.vlgmr.msra.gmra.mrb[0].mxu1 %v6930_v28  ;;  %2138 = vmatpush1.bf16.msra.mxu0 %v6029_v43  ;;  %v6127_v43 = vld [vmem:[#allocation7 + $0x564] ss:$48 sps:$4 sm:$0xff]  }
  0xbd   :  { %1997 = vmatpush1.bf16.msra.mxu1 %v5953_v29  ;;  %2028 = vmatprep.mubr.bf16.mxu1 %v6920_v18  ;;  %v6052_v29 = vld [vmem:[#allocation7 + $0x60c] ss:$48 sps:$4 sm:$0xff]  }
  0xbe   :  { %1998 = vmatprep.subr.bf16.mxu1 %v5961_v30  ;;  %2139 = vmatprep.subr.bf16.mxu0 %v6037_v44  ;;  %v6101_v30 = vld [vmem:[#allocation7 + $0x3e0] ss:$48 sps:$4 sm:$0xff]   ;;  %v6068_v44 = vld [vmem:[#allocation7 + $0x728] ss:$48 sps:$4 sm:$0xff]  }
  0xc0   :  { %2140 = vmatpush1.bf16.msra.mxu0 %v6035_v47  ;;  %v6133_v47 = vld [vmem:[#allocation7 + $0x5c4] ss:$48 sps:$4 sm:$0xff]  }
  0xc1   :  { %1999 = vmatpush1.bf16.msra.mxu1 %v5959_v33  ;;  %2254 = vmatprep.subr.bf16.mxu0 %v6043_v48  ;;  %v6058_v33 = vld [vmem:[#allocation7 + $0x66c] ss:$48 sps:$4 sm:$0xff]   ;;  %v6074_v48 = vld [vmem:[#allocation7 + $0x788] ss:$48 sps:$4 sm:$0xff]  }
  0xc2   :  { %2000 = vmatprep.subr.bf16.mxu1 %v5967_v34  ;;  %v6107_v34 = vld [vmem:[#allocation7 + $0x440] ss:$48 sps:$4 sm:$0xff]  }
  0xc3   :  { %2158 = vmatmul.mubr.bf16.vlgmr.msra.gmra.mrb[0].mxu0 %v6930_v28 }
  0xc4   :  { %2255 = vmatpush1.bf16.msra.mxu0 %v6041_v51  ;;  %2286 = vmatprep.mubr.bf16.mxu0 %v6920_v18  ;;  %v6016_v18 = vld [vmem:[#allocation7 + $0x3cc] ss:$48 sps:$4 sm:$0xff]   ;;  %v6139_v51 = vld [vmem:[#allocation7 + $0x624] ss:$48 sps:$4 sm:$0xff]  }
  0xc5   :  { %2001 = vmatpush1.bf16.msra.mxu1 %v5965_v37  ;;  %2256 = vmatprep.subr.bf16.mxu0 %v6049_v52  ;;  %v6064_v37 = vld [vmem:[#allocation7 + $0x6cc] ss:$48 sps:$4 sm:$0xff]   ;;  %v6080_v52 = vld [vmem:[#allocation7 + $0x7e8] ss:$48 sps:$4 sm:$0xff]  }
  0xc6   :  { %2002 = vmatprep.subr.bf16.mxu1 %v5973_v38  ;;  %v6113_v38 = vld [vmem:[#allocation7 + $0x4a0] ss:$48 sps:$4 sm:$0xff]  }
  0xc8   :  { %2257 = vmatpush1.bf16.msra.mxu0 %v6047_v55  ;;  %v6145_v55 = vld [vmem:[#allocation7 + $0x684] ss:$48 sps:$4 sm:$0xff]  }
  0xc9   :  { %2003 = vmatpush1.bf16.msra.mxu1 %v5971_v41  ;;  %2258 = vmatprep.subr.bf16.mxu0 %v6055_v56  ;;  %v6070_v41 = vld [vmem:[#allocation7 + $0x72c] ss:$48 sps:$4 sm:$0xff]   ;;  %v6086_v56 = vld [vmem:[#allocation7 + $0x848] ss:$48 sps:$4 sm:$0xff]  }
  0xca   :  { %2004 = vmatprep.subr.bf16.mxu1 %v5979_v42  ;;  %v6119_v42 = vld [vmem:[#allocation7 + $0x500] ss:$48 sps:$4 sm:$0xff]  }
  0xcc   :  { %2259 = vmatpush1.bf16.msra.mxu0 %v6053_v60  ;;  %v6151_v60 = vld [vmem:[#allocation7 + $0x6e4] ss:$48 sps:$4 sm:$0xff]  }
  0xcd   :  { %2005 = vmatpush1.bf16.msra.mxu1 %v5977_v45  ;;  %2260 = vmatprep.subr.bf16.mxu0 %v6061_v61  ;;  %v6076_v45 = vld [vmem:[#allocation7 + $0x78c] ss:$48 sps:$4 sm:$0xff]   ;;  %v6092_v61 = vld [vmem:[#allocation7 + $0x8a8] ss:$48 sps:$4 sm:$0xff]  }
  0xce   :  { %2006 = vmatprep.subr.bf16.mxu1 %v5985_v46  ;;  %v6125_v46 = vld [vmem:[#allocation7 + $0x560] ss:$48 sps:$4 sm:$0xff]  }
  0xd0   :  { %2261 = vmatpush1.bf16.msra.mxu0 %v6059_v1  ;;  %v6157_v1 = vld [vmem:[#allocation7 + $0x744] ss:$48 sps:$4 sm:$0xff]  }
  0xd1   :  { %2007 = vmatpush1.bf16.msra.mxu1 %v5983_v49  ;;  %2262 = vmatprep.subr.bf16.mxu0 %v6067_v2  ;;  %v6082_v49 = vld [vmem:[#allocation7 + $0x7ec] ss:$48 sps:$4 sm:$0xff]   ;;  %v6098_v2 = vld [vmem:[#allocation7 + $0x18] ss:$48 sps:$4 sm:$0xff]  }
  0xd2   :  { %2008 = vmatprep.subr.bf16.mxu1 %v5991_v50  ;;  %v6131_v50 = vld [vmem:[#allocation7 + $0x5c0] ss:$48 sps:$4 sm:$0xff]  }
  0xd4   :  { %2263 = vmatpush1.bf16.msra.mxu0 %v6065_v4  ;;  %v6104_v4 = vld [vmem:[#allocation7 + $0x78] ss:$48 sps:$4 sm:$0xff]  }
  0xd5   :  { %2009 = vmatpush1.bf16.msra.mxu1 %v5989_v53  ;;  %2264 = vmatprep.subr.bf16.mxu0 %v6073_v5  ;;  %v6088_v53 = vld [vmem:[#allocation7 + $0x84c] ss:$48 sps:$4 sm:$0xff]  }
  0xd6   :  { %2010 = vmatprep.subr.bf16.mxu1 %v5998_v54  ;;  %v6137_v54 = vld [vmem:[#allocation7 + $0x620] ss:$48 sps:$4 sm:$0xff]   ;;  %v6112_v5 = vld [vmem:[#allocation7 + $0xdc] ss:$48 sps:$4 sm:$0xff]  }
  0xd8   :  { %2265 = vmatpush1.bf16.msra.mxu0 %v6071_v8  ;;  %v6110_v8 = vld [vmem:[#allocation7 + $0xd8] ss:$48 sps:$4 sm:$0xff]  }
  0xd9   :  { %2011 = vmatpush1.bf16.msra.mxu1 %v5996_v58  ;;  %2266 = vmatprep.subr.bf16.mxu0 %v6079_v9  ;;  %v6094_v58 = vld [vmem:[#allocation7 + $0x8ac] ss:$48 sps:$4 sm:$0xff]   ;;  %v6169_v9 = vld [vmem:[#allocation7 + $0x804] ss:$48 sps:$4 sm:$0xff]  }
  0xda   :  { %2012 = vmatprep.subr.bf16.mxu1 %v6004_v59  ;;  %v6143_v59 = vld [vmem:[#allocation7 + $0x680] ss:$48 sps:$4 sm:$0xff]  }
  0xdc   :  { %2267 = vmatpush1.bf16.msra.mxu0 %v6077_v12  ;;  %v6175_v12 = vld [vmem:[#allocation7 + $0x864] ss:$48 sps:$4 sm:$0xff]  }
  0xdd   :  { %2013 = vmatpush1.bf16.msra.mxu1 %v6002_v62  ;;  %2268 = vmatprep.subr.bf16.mxu0 %v6085_v13  ;;  %v6100_v62 = vld [vmem:[#allocation7 + $0x1c] ss:$48 sps:$4 sm:$0xff]   ;;  %v6116_v13 = vld [vmem:[#allocation7 + $0x138] ss:$48 sps:$4 sm:$0xff]  }
  0xde   :  { %2014 = vmatprep.subr.bf16.mxu1 %v6010_v0  ;;  %v6149_v0 = vld [vmem:[#allocation7 + $0x6e0] ss:$48 sps:$4 sm:$0xff]  }
  0xe0   :  { %2269 = vmatpush1.bf16.msra.mxu0 %v6083_v16  ;;  %v6181_v16 = vld [vmem:[#allocation7 + $0x8c4] ss:$48 sps:$4 sm:$0xff]  }
  0xe1   :  { %2015 = vmatpush1.bf16.msra.mxu1 %v6008_v3  ;;  %2270 = vmatprep.subr.bf16.mxu0 %v6091_v17  ;;  %v6106_v3 = vld [vmem:[#allocation7 + $0x7c] ss:$48 sps:$4 sm:$0xff]   ;;  %v6122_v17 = vld [vmem:[#allocation7 + $0x198] ss:$48 sps:$4 sm:$0xff]  }
  0xe2   :  { %2016 = vmatprep.subr.bf16.mxu1 %v6016_v18  ;;  %v6163_v18 = vld [vmem:[#allocation7 + $0x7a4] ss:$48 sps:$4 sm:$0xff]  }
  0xe4   :  { %2271 = vmatpush1.bf16.msra.mxu0 %v6089_v21  ;;  %v6190_v21 = vld [vmem:[#allocation10 + $0x4] ss:$12 sps:$4 sm:$0xff]  }
  0xe5   :  { %2017 = vmatpush1.bf16.msra.mxu1 %v6014_v6  ;;  %2272 = vmatprep.subr.bf16.mxu0 %v6097_v22  ;;  %v6941_v6 = vld [vmem:[#allocation4 + $0x4] ss:$12 sps:$4 sm:$0xff]  }
  0xe6   :  { %2018 = vmatprep.subr.bf16.mxu1 %v6022_v7  ;;  %v6161_v7 = vld [vmem:[#allocation7 + $0x7a0] ss:$48 sps:$4 sm:$0xff]   ;;  %v6128_v22 = vld [vmem:[#allocation7 + $0x1f8] ss:$48 sps:$4 sm:$0xff]  }
  0xe8   :  { %2273 = vmatpush1.bf16.msra.mxu0 %v6095_v25  ;;  %v6196_v25 = vld [vmem:[#allocation10 + $0x1c] ss:$12 sps:$4 sm:$0xff]  }
  0xe9   :  { %2019 = vmatpush1.bf16.msra.mxu1 %v6020_v10  ;;  %2274 = vmatprep.subr.bf16.mxu0 %v6103_v26  ;;  %v6118_v10 = vld [vmem:[#allocation7 + $0x13c] ss:$48 sps:$4 sm:$0xff]   ;;  %v6134_v26 = vld [vmem:[#allocation7 + $0x258] ss:$48 sps:$4 sm:$0xff]  }
  0xea   :  { %2020 = vmatprep.subr.bf16.mxu1 %v6028_v11  ;;  %v6167_v11 = vld [vmem:[#allocation7 + $0x800] ss:$48 sps:$4 sm:$0xff]  }
  0xec   :  { %2275 = vmatpush1.bf16.msra.mxu0 %v6101_v30  ;;  %v6202_v30 = vld [vmem:[#allocation10 + $0x34] ss:$12 sps:$4 sm:$0xff]  }
  0xed   :  { %2021 = vmatpush1.bf16.msra.mxu1 %v6026_v14  ;;  %2276 = vmatprep.subr.bf16.mxu0 %v6109_v31  ;;  %v6124_v14 = vld [vmem:[#allocation7 + $0x19c] ss:$48 sps:$4 sm:$0xff]   ;;  %v6140_v31 = vld [vmem:[#allocation7 + $0x2b8] ss:$48 sps:$4 sm:$0xff]  }
  0xee   :  { %2022 = vmatprep.subr.bf16.mxu1 %v6034_v15  ;;  %v6173_v15 = vld [vmem:[#allocation7 + $0x860] ss:$48 sps:$4 sm:$0xff]  }
  0xf0   :  { %2277 = vmatpush1.bf16.msra.mxu0 %v6107_v34  ;;  %v6208_v34 = vld [vmem:[#allocation10 + $0x4c] ss:$12 sps:$4 sm:$0xff]  }
  0xf1   :  { %2023 = vmatpush1.bf16.msra.mxu1 %v6032_v19  ;;  %2278 = vmatprep.subr.bf16.mxu0 %v6115_v35  ;;  %v6130_v19 = vld [vmem:[#allocation7 + $0x1fc] ss:$48 sps:$4 sm:$0xff]   ;;  %v6146_v35 = vld [vmem:[#allocation7 + $0x318] ss:$48 sps:$4 sm:$0xff]  }
  0xf2   :  { %2024 = vmatprep.subr.bf16.mxu1 %v6040_v20  ;;  %v6179_v20 = vld [vmem:[#allocation7 + $0x8c0] ss:$48 sps:$4 sm:$0xff]  }
  0xf4   :  { %2279 = vmatpush1.bf16.msra.mxu0 %v6113_v38  ;;  %v6152_v38 = vld [vmem:[#allocation7 + $0x378] ss:$48 sps:$4 sm:$0xff]  }
  0xf5   :  { %2025 = vmatpush1.bf16.msra.mxu1 %v6038_v23  ;;  %2280 = vmatprep.subr.bf16.mxu0 %v6121_v39  ;;  %v6136_v23 = vld [vmem:[#allocation7 + $0x25c] ss:$48 sps:$4 sm:$0xff]  }
  0xf6   :  { %2026 = vmatprep.subr.bf16.mxu1 %v6046_v24  ;;  %v6188_v24 = vld [vmem:[#allocation10] ss:$12 sps:$4 sm:$0xff]  }
  0xf7   :  { %v6160_v39 = vld [vmem:[#allocation7 + $0x3dc] ss:$48 sps:$4 sm:$0xff]  }
  0xf8   :  { %2281 = vmatpush1.bf16.msra.mxu0 %v6119_v42  ;;  %v6158_v42 = vld [vmem:[#allocation7 + $0x3d8] ss:$48 sps:$4 sm:$0xff]  }
  0xf9   :  { %2027 = vmatpush1.bf16.msra.mxu1 %v6044_v27  ;;  %2282 = vmatprep.subr.bf16.mxu0 %v6127_v43  ;;  %v6142_v27 = vld [vmem:[#allocation7 + $0x2bc] ss:$48 sps:$4 sm:$0xff]  }
  0xfa   :  { %2039 = vmatprep.subr.bf16.mxu1 %v6052_v29  ;;  %v6194_v29 = vld [vmem:[#allocation10 + $0x18] ss:$12 sps:$4 sm:$0xff]   ;;  %v6166_v43 = vld [vmem:[#allocation7 + $0x43c] ss:$48 sps:$4 sm:$0xff]  }
  0xfc   :  { %2029 = vmatmul.mubr.bf16.vlgmr.msra.gmra.mrb[4].mxu1 %v6924_v57  ;;  %2283 = vmatpush1.bf16.msra.mxu0 %v6125_v46  ;;  %v6164_v46 = vld [vmem:[#allocation7 + $0x438] ss:$48 sps:$4 sm:$0xff]  }
  0xfd   :  { %2040 = vmatpush1.bf16.msra.mxu1 %v6050_v32  ;;  %2071 = vmatprep.mubr.bf16.mxu1 %v6821_v63  ;;  %v6148_v32 = vld [vmem:[#allocation7 + $0x31c] ss:$48 sps:$4 sm:$0xff]  }
  0xfe   :  { %2041 = vmatprep.subr.bf16.mxu1 %v6058_v33  ;;  %2284 = vmatprep.subr.bf16.mxu0 %v6133_v47  ;;  %v6200_v33 = vld [vmem:[#allocation10 + $0x30] ss:$12 sps:$4 sm:$0xff]  }
  0xff   :  { %v6172_v47 = vld [vmem:[#allocation7 + $0x49c] ss:$48 sps:$4 sm:$0xff]  }
 0x100   :  { %2285 = vmatpush1.bf16.msra.mxu0 %v6131_v50  ;;  %v6170_v50 = vld [vmem:[#allocation7 + $0x498] ss:$48 sps:$4 sm:$0xff]  }
 0x101   :  { %2042 = vmatpush1.bf16.msra.mxu1 %v6056_v36  ;;  %2297 = vmatprep.subr.bf16.mxu0 %v6139_v51  ;;  %v6154_v36 = vld [vmem:[#allocation7 + $0x37c] ss:$48 sps:$4 sm:$0xff]  }
 0x102   :  { %2043 = vmatprep.subr.bf16.mxu1 %v6064_v37  ;;  %v6206_v37 = vld [vmem:[#allocation10 + $0x48] ss:$12 sps:$4 sm:$0xff]   ;;  %v6178_v51 = vld [vmem:[#allocation7 + $0x4fc] ss:$48 sps:$4 sm:$0xff]  }
 0x103   :  { %2287 = vmatmul.mubr.bf16.vlgmr.msra.gmra.mrb[4].mxu0 %v6924_v57  ;;  %v6155_v57 = vld [vmem:[#allocation7 + $0x740] ss:$48 sps:$4 sm:$0xff]  }
 0x104   :  { %2298 = vmatpush1.bf16.msra.mxu0 %v6137_v54  ;;  %2329 = vmatprep.mubr.bf16.mxu0 %v6821_v63  ;;  %v6176_v54 = vld [vmem:[#allocation7 + $0x4f8] ss:$48 sps:$4 sm:$0xff]  }
 0x105   :  { %2044 = vmatpush1.bf16.msra.mxu1 %v6062_v40  ;;  %2299 = vmatprep.subr.bf16.mxu0 %v6145_v55  ;;  %v6212_v40 = vld [vmem:[#allocation10 + $0x60] ss:$12 sps:$4 sm:$0xff]  }
 0x106   :  { %2045 = vmatprep.subr.bf16.mxu1 %v6070_v41  ;;  %v6220_v41 = vld [vmem:[#allocation10 + $0x7c] ss:$12 sps:$4 sm:$0xff]   ;;  %v6184_v55 = vld [vmem:[#allocation7 + $0x55c] ss:$48 sps:$4 sm:$0xff]  }
 0x108   :  { %2300 = vmatpush1.bf16.msra.mxu0 %v6143_v59  ;;  %v6182_v59 = vld [vmem:[#allocation7 + $0x558] ss:$48 sps:$4 sm:$0xff]  }
 0x109   :  { %2046 = vmatpush1.bf16.msra.mxu1 %v6068_v44  ;;  %2301 = vmatprep.subr.bf16.mxu0 %v6151_v60  ;;  %v6218_v44 = vld [vmem:[#allocation10 + $0x78] ss:$12 sps:$4 sm:$0xff]   ;;  %v6187_v60 = vld [vmem:[#allocation7 + $0x5bc] ss:$48 sps:$4 sm:$0xff]  }
 0x10a   :  { %2047 = vmatprep.subr.bf16.mxu1 %v6076_v45  ;;  %v6226_v45 = vld [vmem:[#allocation10 + $0x94] ss:$12 sps:$4 sm:$0xff]  }
 0x10c   :  { %2302 = vmatpush1.bf16.msra.mxu0 %v6149_v0  ;;  %v6185_v0 = vld [vmem:[#allocation7 + $0x5b8] ss:$48 sps:$4 sm:$0xff]  }
 0x10d   :  { %2048 = vmatpush1.bf16.msra.mxu1 %v6074_v48  ;;  %2303 = vmatprep.subr.bf16.mxu0 %v6157_v1  ;;  %v6224_v48 = vld [vmem:[#allocation10 + $0x90] ss:$12 sps:$4 sm:$0xff]  }
 0x10e   :  { %2049 = vmatprep.subr.bf16.mxu1 %v6082_v49  ;;  %v6232_v49 = vld [vmem:[#allocation10 + $0xac] ss:$12 sps:$4 sm:$0xff]   ;;  %v6193_v1 = vld [vmem:[#allocation7 + $0x61c] ss:$48 sps:$4 sm:$0xff]  }
 0x110   :  { %2304 = vmatpush1.bf16.msra.mxu0 %v6155_v57  ;;  %v6256_v57 = vld [vmem:[#allocation10 + $0x10c] ss:$12 sps:$4 sm:$0xff]  }
 0x111   :  { %2050 = vmatpush1.bf16.msra.mxu1 %v6080_v52  ;;  %2305 = vmatprep.subr.bf16.mxu0 %v6163_v18  ;;  %v6230_v52 = vld [vmem:[#allocation10 + $0xa8] ss:$12 sps:$4 sm:$0xff]   ;;  %v6199_v18 = vld [vmem:[#allocation7 + $0x67c] ss:$48 sps:$4 sm:$0xff]  }
 0x112   :  { %2051 = vmatprep.subr.bf16.mxu1 %v6088_v53  ;;  %v6238_v53 = vld [vmem:[#allocation10 + $0xc4] ss:$12 sps:$4 sm:$0xff]  }
 0x114   :  { %2306 = vmatpush1.bf16.msra.mxu0 %v6161_v7  ;;  %v6945_v7 = vld [vmem:[#allocation4] ss:$12 sps:$4 sm:$0xff]  }
 0x115   :  { %2052 = vmatpush1.bf16.msra.mxu1 %v6086_v56  ;;  %2307 = vmatprep.subr.bf16.mxu0 %v6169_v9  ;;  %v6236_v56 = vld [vmem:[#allocation10 + $0xc0] ss:$12 sps:$4 sm:$0xff]  }
 0x116   :  { %2053 = vmatprep.subr.bf16.mxu1 %v6094_v58  ;;  %v6244_v58 = vld [vmem:[#allocation10 + $0xdc] ss:$12 sps:$4 sm:$0xff]   ;;  %v6205_v9 = vld [vmem:[#allocation7 + $0x6dc] ss:$48 sps:$4 sm:$0xff]  }
 0x118   :  { %2308 = vmatpush1.bf16.msra.mxu0 %v6167_v11  ;;  %v6268_v11 = vld [vmem:[#allocation10 + $0x13c] ss:$12 sps:$4 sm:$0xff]  }
 0x119   :  { %2054 = vmatpush1.bf16.msra.mxu1 %v6092_v61  ;;  %2309 = vmatprep.subr.bf16.mxu0 %v6175_v12  ;;  %v6242_v61 = vld [vmem:[#allocation10 + $0xd8] ss:$12 sps:$4 sm:$0xff]   ;;  %v6203_v12 = vld [vmem:[#allocation7 + $0x6d8] ss:$48 sps:$4 sm:$0xff]  }
 0x11a   :  { %2168 = vmatprep.subr.bf16.mxu1 %v6100_v62  ;;  %v6250_v62 = vld [vmem:[#allocation10 + $0xf4] ss:$12 sps:$4 sm:$0xff]  }
 0x11c   :  { %2072 = vmatmul.mubr.bf16.vlgmr.msra.gmra.mrb[4].mxu1 %v6930_v28  ;;  %2310 = vmatpush1.bf16.msra.mxu0 %v6173_v15  ;;  %v6274_v15 = vld [vmem:[#allocation10 + $0x154] ss:$12 sps:$4 sm:$0xff]  }
 0x11d   :  { %2169 = vmatpush1.bf16.msra.mxu1 %v6098_v2  ;;  %2200 = vmatprep.mubr.bf16.mxu1 %v6941_v6  ;;  %v6248_v2 = vld [vmem:[#allocation10 + $0xf0] ss:$12 sps:$4 sm:$0xff]  }
 0x11e   :  { %2170 = vmatprep.subr.bf16.mxu1 %v6106_v3  ;;  %2311 = vmatprep.subr.bf16.mxu0 %v6181_v16  ;;  %v6191_v3 = vld [vmem:[#allocation7 + $0x618] ss:$48 sps:$4 sm:$0xff]  }
 0x11f   :  { %v6209_v16 = vld [vmem:[#allocation7 + $0x738] ss:$48 sps:$4 sm:$0xff]  }
 0x120   :  { %2312 = vmatpush1.bf16.msra.mxu0 %v6179_v20  ;;  %v6280_v20 = vld [vmem:[#allocation10 + $0x16c] ss:$12 sps:$4 sm:$0xff]  }
 0x121   :  { %2171 = vmatpush1.bf16.msra.mxu1 %v6104_v4  ;;  %4388 = vmatprep.subr.bf16.mxu0 %v6190_v21  ;;  %v6254_v4 = vld [vmem:[#allocation10 + $0x108] ss:$12 sps:$4 sm:$0xff]   ;;  %v6215_v21 = vld [vmem:[#allocation7 + $0x798] ss:$48 sps:$4 sm:$0xff]  }
 0x122   :  { %2172 = vmatprep.subr.bf16.mxu1 %v6112_v5  ;;  %v6262_v5 = vld [vmem:[#allocation10 + $0x124] ss:$12 sps:$4 sm:$0xff]  }
 0x123   :  { %2330 = vmatmul.mubr.bf16.vlgmr.msra.gmra.mrb[4].mxu0 %v6930_v28  ;;  %v6214_v28 = vld [vmem:[#allocation10 + $0x64] ss:$12 sps:$4 sm:$0xff]  }
 0x124   :  { %4389 = vmatpush1.bf16.msra.mxu0 %v6188_v24  ;;  %v6310_v24 = vld [vmem:[#allocation10 + $0x184] ss:$12 sps:$4 sm:$0xff]  }
 0x125   :  { %2173 = vmatpush1.bf16.msra.mxu1 %v6110_v8  ;;  %4390 = vmatprep.subr.bf16.mxu0 %v6196_v25  ;;  %v6197_v8 = vld [vmem:[#allocation7 + $0x678] ss:$48 sps:$4 sm:$0xff]  }
 0x126   :  { %2174 = vmatprep.subr.bf16.mxu1 %v6118_v10  ;;  %v6260_v10 = vld [vmem:[#allocation10 + $0x120] ss:$12 sps:$4 sm:$0xff]  }
 0x127   :  { %v6221_v25 = vld [vmem:[#allocation7 + $0x7f8] ss:$48 sps:$4 sm:$0xff]  }
 0x128   :  { %4391 = vmatpush1.bf16.msra.mxu0 %v6194_v29  ;;  %v6235_v29 = vld [vmem:[#allocation7 + $0x8bc] ss:$48 sps:$4 sm:$0xff]  }
 0x129   :  { %2175 = vmatpush1.bf16.msra.mxu1 %v6116_v13  ;;  %4392 = vmatprep.subr.bf16.mxu0 %v6202_v30  ;;  %v6211_v13 = vld [vmem:[#allocation7 + $0x73c] ss:$48 sps:$4 sm:$0xff]   ;;  %v6233_v30 = vld [vmem:[#allocation7 + $0x8b8] ss:$48 sps:$4 sm:$0xff]  }
 0x12a   :  { %2176 = vmatprep.subr.bf16.mxu1 %v6124_v14  ;;  %v6266_v14 = vld [vmem:[#allocation10 + $0x138] ss:$12 sps:$4 sm:$0xff]  }
 0x12c   :  { %4393 = vmatpush1.bf16.msra.mxu0 %v6200_v33  ;;  %v6247_v33 = vld [vmem:[#allocation7 + $0x8c] ss:$48 sps:$4 sm:$0xff]  }
 0x12d   :  { %2177 = vmatpush1.bf16.msra.mxu1 %v6122_v17  ;;  %4394 = vmatprep.subr.bf16.mxu0 %v6208_v34  ;;  %v6217_v17 = vld [vmem:[#allocation7 + $0x79c] ss:$48 sps:$4 sm:$0xff]  }
 0x12e   :  { %2178 = vmatprep.subr.bf16.mxu1 %v6130_v19  ;;  %v6272_v19 = vld [vmem:[#allocation10 + $0x150] ss:$12 sps:$4 sm:$0xff]  }
 0x12f   :  { %v6949_v34 = vld [vmem:[#allocation4 + $0x8] ss:$12 sps:$4 sm:$0xff]  }
 0x130   :  { %4395 = vmatpush1.bf16.msra.mxu0 %v6206_v37  ;;  %v6251_v37 = vld [vmem:[#allocation7 + $0xe8] ss:$48 sps:$4 sm:$0xff]  }
 0x131   :  { %2179 = vmatpush1.bf16.msra.mxu1 %v6128_v22  ;;  %4396 = vmatprep.subr.bf16.mxu0 %v6214_v28  ;;  %v6223_v22 = vld [vmem:[#allocation7 + $0x7fc] ss:$48 sps:$4 sm:$0xff]   ;;  %v394_v28 = vlaneseq }
 0x132   :  { %2180 = vmatprep.subr.bf16.mxu1 %v6136_v23  ;;  %v6278_v23 = vld [vmem:[#allocation10 + $0x168] ss:$12 sps:$4 sm:$0xff]  }
 0x134   :  { %4397 = vmatpush1.bf16.msra.mxu0 %v6212_v40  ;;  %v6954_v40 = vshrl.u32 %v394_v28, 7 }
 0x135   :  { %2181 = vmatpush1.bf16.msra.mxu1 %v6134_v26  ;;  %4398 = vmatprep.subr.bf16.mxu0 %v6220_v41  ;;  %v6229_v26 = vld [vmem:[#allocation7 + $0x85c] ss:$48 sps:$4 sm:$0xff]  }
 0x136   :  { %2182 = vmatprep.subr.bf16.mxu1 %v6142_v27  ;;  %v6227_v27 = vld [vmem:[#allocation7 + $0x858] ss:$48 sps:$4 sm:$0xff]   ;;  %v6265_v41 = vld [vmem:[#allocation7 + $0x1ac] ss:$48 sps:$4 sm:$0xff]  }
 0x138   :  { %4399 = vmatpush1.bf16.msra.mxu0 %v6218_v44  ;;  %v6959_v44 = vsub.s32 0, %v6954_v40 }
 0x139   :  { %2183 = vmatpush1.bf16.msra.mxu1 %v6140_v31  ;;  %4400 = vmatprep.subr.bf16.mxu0 %v6226_v45  ;;  %v6241_v31 = vld [vmem:[#allocation7 + $0x2c] ss:$48 sps:$4 sm:$0xff]   ;;  %v6962_v45 = vsub.s32 1, %v6954_v40 }
 0x13a   :  { %2184 = vmatprep.subr.bf16.mxu1 %v6148_v32  ;;  %v6239_v32 = vld [vmem:[#allocation7 + $0x28] ss:$48 sps:$4 sm:$0xff]  }
 0x13c   :  { %4401 = vmatpush1.bf16.msra.mxu0 %v6224_v48  ;;  %v6277_v48 = vld [vmem:[#allocation7 + $0x26c] ss:$48 sps:$4 sm:$0xff]  }
 0x13d   :  { %2185 = vmatpush1.bf16.msra.mxu1 %v6146_v35  ;;  %4402 = vmatprep.subr.bf16.mxu0 %v6232_v49  ;;  %v6245_v35 = vld [vmem:[#allocation7 + $0x88] ss:$48 sps:$4 sm:$0xff]  }
 0x13e   :  { %2186 = vmatprep.subr.bf16.mxu1 %v6154_v36  ;;  %v6253_v36 = vld [vmem:[#allocation7 + $0xec] ss:$48 sps:$4 sm:$0xff]  }
 0x140   :  { %4403 = vmatpush1.bf16.msra.mxu0 %v6230_v52 }
 0x141   :  { %2187 = vmatpush1.bf16.msra.mxu1 %v6152_v38  ;;  %4404 = vmatprep.subr.bf16.mxu0 %v6238_v53  ;;  %v6259_v38 = vld [vmem:[#allocation7 + $0x14c] ss:$48 sps:$4 sm:$0xff]   ;;  %v6275_v53 = vld [vmem:[#allocation7 + $0x268] ss:$48 sps:$4 sm:$0xff]  }
 0x142   :  { %2188 = vmatprep.subr.bf16.mxu1 %v6160_v39  ;;  %v6257_v39 = vld [vmem:[#allocation7 + $0x148] ss:$48 sps:$4 sm:$0xff]  }
 0x144   :  { %4405 = vmatpush1.bf16.msra.mxu0 %v6236_v56 }
 0x145   :  { %2189 = vmatpush1.bf16.msra.mxu1 %v6158_v42  ;;  %4406 = vmatprep.subr.bf16.mxu0 %v6244_v58  ;;  %v6263_v42 = vld [vmem:[#allocation7 + $0x1a8] ss:$48 sps:$4 sm:$0xff]  }
 0x146   :  { %2190 = vmatprep.subr.bf16.mxu1 %v6166_v43  ;;  %v6956_v43 = vld [vmem:[#allocation9] sm:$0xff] }
 0x147   :  { %v401_v49 = vrot.slane %v6956_v43, %v6962_v45 }
 0x148   :  { %4407 = vmatpush1.bf16.msra.mxu0 %v6242_v61  ;;  %v6281_v61 = vld [vmem:[#allocation7 + $0x2c8] ss:$48 sps:$4 sm:$0xff]  }
 0x149   :  { %2191 = vmatpush1.bf16.msra.mxu1 %v6164_v46  ;;  %4408 = vmatprep.subr.bf16.mxu0 %v6250_v62  ;;  %v6269_v46 = vld [vmem:[#allocation7 + $0x208] ss:$48 sps:$4 sm:$0xff]  }
 0x14a   :  { %2192 = vmatprep.subr.bf16.mxu1 %v6172_v47  ;;  %v397_v47 = vrot.slane %v6956_v43, %v6959_v44 }
 0x14c   :  { %4409 = vmatpush1.bf16.msra.mxu0 %v6248_v2  ;;  %v6286_v2 = vld [vmem:[#allocation7 + $0x32c] ss:$48 sps:$4 sm:$0xff]  }
 0x14d   :  { %2193 = vmatpush1.bf16.msra.mxu1 %v6170_v50  ;;  %4410 = vmatprep.subr.bf16.mxu0 %v6256_v57 }
 0x14e   :  { %2194 = vmatprep.subr.bf16.mxu1 %v6178_v51 }
 0x150   :  { %4411 = vmatpush1.bf16.msra.mxu0 %v6254_v4  ;;  %v6284_v4 = vld [vmem:[#allocation7 + $0x328] ss:$48 sps:$4 sm:$0xff]  }
 0x151   :  { %2195 = vmatpush1.bf16.msra.mxu1 %v6176_v54  ;;  %4412 = vmatprep.subr.bf16.mxu0 %v6262_v5  ;;  %v6283_v54 = vld [vmem:[#allocation7 + $0x2cc] ss:$48 sps:$4 sm:$0xff]  }
 0x152   :  { %2196 = vmatprep.subr.bf16.mxu1 %v6184_v55  ;;  %v6308_v5 = vld [vmem:[#allocation10 + $0x180] ss:$12 sps:$4 sm:$0xff]  }
 0x154   :  { %4413 = vmatpush1.bf16.msra.mxu0 %v6260_v10  ;;  %v6287_v10 = vld [vmem:[#allocation7 + $0x388] ss:$48 sps:$4 sm:$0xff]  }
 0x155   :  { %2197 = vmatpush1.bf16.msra.mxu1 %v6182_v59  ;;  %4414 = vmatprep.subr.bf16.mxu0 %v6268_v11  ;;  %v6314_v11 = vld [vmem:[#allocation10 + $0x198] ss:$12 sps:$4 sm:$0xff]  }
 0x156   :  { %2198 = vmatprep.subr.bf16.mxu1 %v6187_v60 }
 0x158   :  { %4415 = vmatpush1.bf16.msra.mxu0 %v6266_v14  ;;  %v412_v14 = vsub.s32 4, %v6954_v40 }
 0x159   :  { %2199 = vmatpush1.bf16.msra.mxu1 %v6185_v0  ;;  %4416 = vmatprep.subr.bf16.mxu0 %v6274_v15  ;;  %v416_v15 = vsub.s32 5, %v6954_v40 }
 0x15a   :  { %2211 = vmatprep.subr.bf16.mxu1 %v6193_v1 }
 0x15c   :  { %2201 = vmatmul.mubr.bf16.vlgmr.msra.gmra.mrb[8].mxu1 %v6945_v7  ;;  %4417 = vmatpush1.bf16.msra.mxu0 %v6272_v19  ;;  %v6295_v19 = vld [vmem:[#allocation7 + $0x44c] ss:$48 sps:$4 sm:$0xff]  }
 0x15d   :  { %2212 = vmatpush1.bf16.msra.mxu1 %v6191_v3  ;;  %2243 = vmatprep.mubr.bf16.mxu1 %v6821_v63 }
 0x15e   :  { %2213 = vmatprep.subr.bf16.mxu1 %v6199_v18  ;;  %4418 = vmatprep.subr.bf16.mxu0 %v6280_v20  ;;  %v6328_v20 = vld [vmem:[#allocation10 + $0x1cc] ss:$12 sps:$4 sm:$0xff]  }
 0x160   :  { %4419 = vmatpush1.bf16.msra.mxu0 %v6278_v23  ;;  %v6293_v23 = vld [vmem:[#allocation7 + $0x448] ss:$48 sps:$4 sm:$0xff]  }
 0x161   :  { %2214 = vmatpush1.bf16.msra.mxu1 %v6197_v8  ;;  %4431 = vmatprep.subr.bf16.mxu0 %v6310_v24  ;;  %v6289_v8 = vld [vmem:[#allocation7 + $0x38c] ss:$48 sps:$4 sm:$0xff]   ;;  %v6326_v24 = vld [vmem:[#allocation10 + $0x1c8] ss:$12 sps:$4 sm:$0xff]  }
 0x162   :  { %2215 = vmatprep.subr.bf16.mxu1 %v6205_v9  ;;  %v6316_v9 = vld [vmem:[#allocation10 + $0x19c] ss:$12 sps:$4 sm:$0xff]  }
 0x165   :  { %2216 = vmatpush1.bf16.msra.mxu1 %v6203_v12  ;;  %v6292_v12 = vld [vmem:[#allocation7 + $0x3ec] ss:$48 sps:$4 sm:$0xff]  }
 0x166   :  { %2217 = vmatprep.subr.bf16.mxu1 %v6211_v13  ;;  %v6322_v13 = vld [vmem:[#allocation10 + $0x1b4] ss:$12 sps:$4 sm:$0xff]  }
 0x169   :  { %2218 = vmatpush1.bf16.msra.mxu1 %v6209_v16  ;;  %v6290_v16 = vld [vmem:[#allocation7 + $0x3e8] ss:$48 sps:$4 sm:$0xff]  }
 0x16a   :  { %2219 = vmatprep.subr.bf16.mxu1 %v6217_v17  ;;  %v6320_v17 = vld [vmem:[#allocation10 + $0x1b0] ss:$12 sps:$4 sm:$0xff]  }
 0x16d   :  { %2220 = vmatpush1.bf16.msra.mxu1 %v6215_v21  ;;  %v413_v21 = vrot.slane %v6956_v43, %v412_v14  ;;  %v6329_v14 = vld [vmem:[#allocation7 + $0x748] ss:$48 sps:$4 sm:$0xff]  }
 0x16e   :  { %2221 = vmatprep.subr.bf16.mxu1 %v6223_v22  ;;  %v417_v22 = vrot.slane %v6956_v43, %v416_v15  ;;  %v6370_v15 = vld [vmem:[#allocation10 + $0x288] ss:$12 sps:$4 sm:$0xff]  }
 0x171   :  { %2222 = vmatpush1.bf16.msra.mxu1 %v6221_v25  ;;  %v6298_v25 = vld [vmem:[#allocation7 + $0x4ac] ss:$48 sps:$4 sm:$0xff]  }
 0x172   :  { %2223 = vmatprep.subr.bf16.mxu1 %v6229_v26  ;;  %v6334_v26 = vld [vmem:[#allocation10 + $0x1e4] ss:$12 sps:$4 sm:$0xff]  }
 0x175   :  { %2224 = vmatpush1.bf16.msra.mxu1 %v6227_v27 }
 0x176   :  { %2225 = vmatprep.subr.bf16.mxu1 %v6235_v29 }
 0x179   :  { %2226 = vmatpush1.bf16.msra.mxu1 %v6233_v30 }
 0x17a   :  { %2340 = vmatprep.subr.bf16.mxu1 %v6241_v31 }
 0x17c   :  { %2244 = vmatmul.mubr.bf16.vlgmr.msra.gmra.mrb[8].mxu1 %v6949_v34 }
 0x17d   :  { %2341 = vmatpush1.bf16.msra.mxu1 %v6239_v32  ;;  %2372 = vmatprep.mubr.bf16.mxu1 %v6941_v6  ;;  %v6271_v6 = vld [vmem:[#allocation7 + $0x20c] ss:$48 sps:$4 sm:$0xff]  }
 0x17e   :  { %2342 = vmatprep.subr.bf16.mxu1 %v6247_v33  ;;  %v6332_v33 = vld [vmem:[#allocation10 + $0x1e0] ss:$12 sps:$4 sm:$0xff]  }
 0x181   :  { %2343 = vmatpush1.bf16.msra.mxu1 %v6245_v35 }
 0x182   :  { %2344 = vmatprep.subr.bf16.mxu1 %v6253_v36 }
 0x185   :  { %2345 = vmatpush1.bf16.msra.mxu1 %v6251_v37 }
 0x186   :  { %2346 = vmatprep.subr.bf16.mxu1 %v6259_v38  ;;  %v6296_v38 = vld [vmem:[#allocation7 + $0x4a8] ss:$48 sps:$4 sm:$0xff]  }
 0x189   :  { %2347 = vmatpush1.bf16.msra.mxu1 %v6257_v39 }
 0x18a   :  { %2348 = vmatprep.subr.bf16.mxu1 %v6265_v41 }
 0x18d   :  { %2349 = vmatpush1.bf16.msra.mxu1 %v6263_v42  ;;  %v6340_v42 = vld [vmem:[#allocation10 + $0x1fc] ss:$12 sps:$4 sm:$0xff]  }
 0x18e   :  { %2350 = vmatprep.subr.bf16.mxu1 %v6271_v6  ;;  %v6301_v6 = vld [vmem:[#allocation7 + $0x50c] ss:$48 sps:$4 sm:$0xff]  }
 0x18f   :  { %v1987_v50 = vpop.f32.mrb[0].mxu1 }
 0x190   :  { %v5766_v51 = vadd.f32 %v1987_v50, %v397_v47  ;;  %v1989_v52 = vpop.f32.mrb[1].mxu1  ;;  %v6338_v50 = vld [vmem:[#allocation10 + $0x1f8] ss:$12 sps:$4 sm:$0xff]  }
 0x191   :  { %v5767_v55 = vadd.f32 %v1989_v52, %v401_v49  ;;  %v1991_v56 = vpop.f32.mrb[2].mxu1  ;;  %2351 = vmatpush1.bf16.msra.mxu1 %v6269_v46 }
 0x192   :  { %v5768_v58 = vadd.f32 %v1991_v56, %v397_v47  ;;  %v1993_v59 = vpop.f32.mrb[3].mxu1  ;;  %2352 = vmatprep.subr.bf16.mxu1 %v6277_v48  ;;  %v2426_v62 = vmax.f32 %v5766_v51, 0.0  ;;  %v6299_v48 = vld [vmem:[#allocation7 + $0x508] ss:$48 sps:$4 sm:$0xff]   ;;  %v6304_v51 = vld [vmem:[#allocation7 + $0x56c] ss:$48 sps:$4 sm:$0xff]  }
 0x193   :  { %v5769_v60 = vadd.f32 %v1993_v59, %v401_v49  ;;  %v2427_v0 = vmax.f32 %v5767_v55, 0.0  ;;  %v6344_v55 = vld [vmem:[#allocation10 + $0x210] ss:$12 sps:$4 sm:$0xff]  }
 0x194   :  { %v2438_v1 = vmax.f32 %v5768_v58, 0.0  ;;  %v6307_v56 = vld [vmem:[#allocation7 + $0x5cc] ss:$48 sps:$4 sm:$0xff]   ;;  %v6352_v58 = vld [vmem:[#allocation10 + $0x22c] ss:$12 sps:$4 sm:$0xff]  }
 0x195   :  { %v2439_v3 = vmax.f32 %v5769_v60, 0.0  ;;  %2353 = vmatpush1.bf16.msra.mxu1 %v6275_v53  ;;  %v6346_v53 = vld [vmem:[#allocation10 + $0x214] ss:$12 sps:$4 sm:$0xff]   ;;  %v6305_v59 = vld [vmem:[#allocation7 + $0x5c8] ss:$48 sps:$4 sm:$0xff]  }
 0x196   :  { %v6968_v57 = vpack.c.bf16 %v2438_v1, %v2426_v62  ;;  %2354 = vmatprep.subr.bf16.mxu1 %v6283_v54  ;;  %v2159_v27 = vpop.f32.mrb[0].mxu0  ;;  %v6302_v54 = vld [vmem:[#allocation7 + $0x568] ss:$48 sps:$4 sm:$0xff]   ;;  %v6350_v60 = vld [vmem:[#allocation10 + $0x228] ss:$12 sps:$4 sm:$0xff]  }
 0x197   :  { %v6970_v18 = vpack.c.bf16 %v2439_v3, %v2427_v0  ;;  %v5774_v29 = vadd.f32 %v2159_v27, %v413_v21  ;;  %v2161_v30 = vpop.f32.mrb[1].mxu0  ;;  %v6358_v62 = vld [vmem:[#allocation10 + $0x244] ss:$12 sps:$4 sm:$0xff]   ;;  %v6356_v0 = vld [vmem:[#allocation10 + $0x240] ss:$12 sps:$4 sm:$0xff]  }
 0x198   :  { %v5775_v31 = vadd.f32 %v2161_v30, %v417_v22  ;;  %v2163_v32 = vpop.f32.mrb[2].mxu0  ;;  %v6311_v1 = vld [vmem:[#allocation7 + $0x628] ss:$48 sps:$4 sm:$0xff]   ;;  %v6319_v3 = vld [vmem:[#allocation7 + $0x68c] ss:$48 sps:$4 sm:$0xff]  }
 0x199   :  { %2355 = vmatpush1.bf16.msra.mxu1 %v6281_v61  ;;  %4420 = vmatprep.mubr.bf16.mxu0 %v6970_v18  ;;  %v2430_v35 = vmax.f32 %v5774_v29, 0.0  ;;  %v5776_v36 = vadd.f32 %v2163_v32, %v413_v21  ;;  %v2165_v37 = vpop.f32.mrb[3].mxu0  ;;  %v6313_v61 = vld [vmem:[#allocation7 + $0x62c] ss:$48 sps:$4 sm:$0xff]   ;;  %v6341_v21 = vld [vmem:[#allocation7 + $0x808] ss:$48 sps:$4 sm:$0xff]  }
 0x19a   :  { %4421 = vmatmul.mubr.bf16.vlgmr.msra.gmra.mrb[8].mxu0 %v6968_v57  ;;  %2356 = vmatprep.subr.bf16.mxu1 %v6286_v2  ;;  %v2431_v39 = vmax.f32 %v5775_v31, 0.0  ;;  %v5777_v41 = vadd.f32 %v2165_v37, %v417_v22  ;;  %v6362_v2 = vld [vmem:[#allocation10 + $0x25c] ss:$12 sps:$4 sm:$0xff]   ;;  %v6380_v22 = vld [vmem:[#allocation10 + $0x2b8] ss:$12 sps:$4 sm:$0xff]  }
 0x19b   :  { %4432 = vmatpush1.bf16.msra.mxu0 %v6308_v5  ;;  %v2442_v46 = vmax.f32 %v5776_v36, 0.0  ;;  %v6317_v5 = vld [vmem:[#allocation7 + $0x688] ss:$48 sps:$4 sm:$0xff]   ;;  %v6355_v29 = vld [vmem:[#allocation7 + $0x8cc] ss:$48 sps:$4 sm:$0xff]  }
 0x19c   :  { %4433 = vmatprep.subr.bf16.mxu0 %v6316_v9  ;;  %v2443_v47 = vmax.f32 %v5777_v41, 0.0  ;;  %v6367_v9 = vld [vmem:[#allocation10 + $0x274] ss:$12 sps:$4 sm:$0xff]   ;;  %v6392_v27 = vld [vmem:[#allocation10 + $0x2ec] ss:$12 sps:$4 sm:$0xff]  }
 0x19d   :  { %2357 = vmatpush1.bf16.msra.mxu1 %v6284_v4  ;;  %v6978_v49 = vpack.c.bf16 %v2442_v46, %v2430_v35  ;;  %v6360_v4 = vld [vmem:[#allocation10 + $0x258] ss:$12 sps:$4 sm:$0xff]   ;;  %v6390_v30 = vld [vmem:[#allocation10 + $0x2e8] ss:$12 sps:$4 sm:$0xff]   ;;  %v6353_v31 = vld [vmem:[#allocation7 + $0x8c8] ss:$48 sps:$4 sm:$0xff]  }
 0x19e   :  { %2358 = vmatprep.subr.bf16.mxu1 %v6289_v8  ;;  %v6980_v52 = vpack.c.bf16 %v2443_v47, %v2431_v39  ;;  %v6325_v8 = vld [vmem:[#allocation7 + $0x6ec] ss:$48 sps:$4 sm:$0xff]   ;;  %v6363_v35 = vld [vmem:[#allocation10 + $0x8] ss:$12 sps:$4 sm:$0xff]   ;;  %v6373_v39 = vld [vmem:[#allocation10 + $0x38] ss:$12 sps:$4 sm:$0xff]  }
 0x19f   :  { %4434 = vmatpush1.bf16.msra.mxu0 %v6314_v11  ;;  %v6365_v11 = vld [vmem:[#allocation10 + $0x270] ss:$12 sps:$4 sm:$0xff]   ;;  %v6364_v36 = vld [vmem:[#allocation10 + $0xe0] ss:$12 sps:$4 sm:$0xff]   ;;  %v6987_v46 = vsub.s32 2, %v6954_v40 }
 0x1a0   :  { %4435 = vmatprep.subr.bf16.mxu0 %v6322_v13  ;;  %v6372_v13 = vld [vmem:[#allocation10 + $0x28c] ss:$12 sps:$4 sm:$0xff]   ;;  %v6397_v32 = vld [vmem:[#allocation10 + $0x304] ss:$12 sps:$4 sm:$0xff]   ;;  %v6383_v47 = vld [vmem:[#allocation10 + $0x68] ss:$12 sps:$4 sm:$0xff]  }
 0x1a1   :  { %2359 = vmatpush1.bf16.msra.mxu1 %v6287_v10  ;;  %v6323_v10 = vld [vmem:[#allocation7 + $0x6e8] ss:$48 sps:$4 sm:$0xff]  }
 0x1a2   :  { %2360 = vmatprep.subr.bf16.mxu1 %v6292_v12  ;;  %v6331_v12 = vld [vmem:[#allocation7 + $0x74c] ss:$48 sps:$4 sm:$0xff]  }
 0x1a3   :  { %4436 = vmatpush1.bf16.msra.mxu0 %v6320_v17  ;;  %v6335_v17 = vld [vmem:[#allocation7 + $0x7a8] ss:$48 sps:$4 sm:$0xff]  }
 0x1a4   :  { %4437 = vmatprep.subr.bf16.mxu0 %v6328_v20  ;;  %v6382_v20 = vld [vmem:[#allocation10 + $0x2bc] ss:$12 sps:$4 sm:$0xff]   ;;  %v6368_v37 = vld [vmem:[#allocation10 + $0x20] ss:$12 sps:$4 sm:$0xff]  }
 0x1a5   :  { %2361 = vmatpush1.bf16.msra.mxu1 %v6290_v16  ;;  %v6377_v16 = vld [vmem:[#allocation10 + $0x2a4] ss:$12 sps:$4 sm:$0xff]  }
 0x1a6   :  { %2362 = vmatprep.subr.bf16.mxu1 %v6295_v19  ;;  %v6343_v19 = vld [vmem:[#allocation7 + $0x80c] ss:$48 sps:$4 sm:$0xff]  }
 0x1a7   :  { %4438 = vmatpush1.bf16.msra.mxu0 %v6326_v24  ;;  %v6387_v24 = vld [vmem:[#allocation10 + $0x2d4] ss:$12 sps:$4 sm:$0xff]   ;;  %v6374_v41 = vld [vmem:[#allocation10 + $0x110] ss:$12 sps:$4 sm:$0xff]  }
 0x1a8   :  { %4439 = vmatprep.subr.bf16.mxu0 %v6334_v26  ;;  %v6347_v26 = vld [vmem:[#allocation7 + $0x868] ss:$48 sps:$4 sm:$0xff]  }
 0x1a9   :  { %2363 = vmatpush1.bf16.msra.mxu1 %v6293_v23  ;;  %v6349_v23 = vld [vmem:[#allocation7 + $0x86c] ss:$48 sps:$4 sm:$0xff]  }
 0x1aa   :  { %2364 = vmatprep.subr.bf16.mxu1 %v6298_v25  ;;  %v6385_v25 = vld [vmem:[#allocation10 + $0x2d0] ss:$12 sps:$4 sm:$0xff]  }
 0x1ab   :  { %4440 = vmatpush1.bf16.msra.mxu0 %v6332_v33  ;;  %v6359_v33 = vld [vmem:[#allocation10 + $0xc8] ss:$12 sps:$4 sm:$0xff]  }
 0x1ac   :  { %4441 = vmatprep.subr.bf16.mxu0 %v6340_v42  ;;  %v6378_v42 = vld [vmem:[#allocation10 + $0x50] ss:$12 sps:$4 sm:$0xff]  }
 0x1ad   :  { %2365 = vmatpush1.bf16.msra.mxu1 %v6296_v38  ;;  %v6369_v38 = vld [vmem:[#allocation10 + $0xf8] ss:$12 sps:$4 sm:$0xff]  }
 0x1ae   :  { %2366 = vmatprep.subr.bf16.mxu1 %v6301_v6  ;;  %v6379_v6 = vld [vmem:[#allocation10 + $0x128] ss:$12 sps:$4 sm:$0xff]  }
 0x1af   :  { %4442 = vmatpush1.bf16.msra.mxu0 %v6338_v50 }
 0x1b0   :  { %4443 = vmatprep.subr.bf16.mxu0 %v6346_v53  ;;  %v6389_v53 = vld [vmem:[#allocation10 + $0x158] ss:$12 sps:$4 sm:$0xff]  }
 0x1b1   :  { %2367 = vmatpush1.bf16.msra.mxu1 %v6299_v48  ;;  %v405_v48 = vrot.slane %v6956_v43, %v6987_v46 }
 0x1b2   :  { %2368 = vmatprep.subr.bf16.mxu1 %v6304_v51  ;;  %v6388_v51 = vld [vmem:[#allocation10 + $0x80] ss:$12 sps:$4 sm:$0xff]  }
 0x1b3   :  { %4444 = vmatpush1.bf16.msra.mxu0 %v6344_v55 }
 0x1b4   :  { %4445 = vmatprep.subr.bf16.mxu0 %v6352_v58 }
 0x1b5   :  { %2369 = vmatpush1.bf16.msra.mxu1 %v6302_v54 }
 0x1b6   :  { %2370 = vmatprep.subr.bf16.mxu1 %v6307_v56 }
 0x1b7   :  { %4446 = vmatpush1.bf16.msra.mxu0 %v6350_v60  ;;  %v6393_v60 = vld [vmem:[#allocation10 + $0x98] ss:$12 sps:$4 sm:$0xff]  }
 0x1b8   :  { %4447 = vmatprep.subr.bf16.mxu0 %v6358_v62 }
 0x1b9   :  { %2371 = vmatpush1.bf16.msra.mxu1 %v6305_v59 }
 0x1ba   :  { %2383 = vmatprep.subr.bf16.mxu1 %v6313_v61 }
 0x1bb   :  { %4448 = vmatpush1.bf16.msra.mxu0 %v6356_v0  ;;  %v6394_v0 = vld [vmem:[#allocation10 + $0x170] ss:$12 sps:$4 sm:$0xff]  }
 0x1bc   :  { %2373 = vmatmul.mubr.bf16.vlgmr.msra.gmra.mrb[12].mxu1 %v6945_v7  ;;  %4449 = vmatprep.subr.bf16.mxu0 %v6362_v2  ;;  %v6337_v7 = vld [vmem:[#allocation7 + $0x7ac] ss:$48 sps:$4 sm:$0xff]  }
 0x1bd   :  { %2384 = vmatpush1.bf16.msra.mxu1 %v6311_v1  ;;  %2415 = vmatprep.mubr.bf16.mxu1 %v6821_v63  ;;  %v6375_v63 = vld [vmem:[#allocation10 + $0x2a0] ss:$12 sps:$4 sm:$0xff]  }
 0x1be   :  { %2385 = vmatprep.subr.bf16.mxu1 %v6319_v3 }
 0x1bf   :  { %4450 = vmatpush1.bf16.msra.mxu0 %v6360_v4 }
 0x1c0   :  { %4451 = vmatprep.subr.bf16.mxu0 %v6367_v9  ;;  %v6399_v9 = vld [vmem:[#allocation10 + $0x248] ss:$12 sps:$4 sm:$0xff]  }
 0x1c1   :  { %2386 = vmatpush1.bf16.msra.mxu1 %v6317_v5 }
 0x1c2   :  { %2387 = vmatprep.subr.bf16.mxu1 %v6325_v8 }
 0x1c3   :  { %4452 = vmatpush1.bf16.msra.mxu0 %v6365_v11  ;;  %v6395_v11 = vld [vmem:[#allocation10 + $0x300] ss:$12 sps:$4 sm:$0xff]  }
 0x1c4   :  { %4453 = vmatprep.subr.bf16.mxu0 %v6372_v13  ;;  %v6403_v13 = vld [vmem:[#allocation10 + $0x188] ss:$12 sps:$4 sm:$0xff]  }
 0x1c5   :  { %2388 = vmatpush1.bf16.msra.mxu1 %v6323_v10 }
 0x1c6   :  { %2389 = vmatprep.subr.bf16.mxu1 %v6331_v12  ;;  %v6402_v12 = vld [vmem:[#allocation10 + $0x31c] ss:$12 sps:$4 sm:$0xff]  }
 0x1c7   :  { %4454 = vmatpush1.bf16.msra.mxu0 %v6370_v15  ;;  %v6400_v15 = vld [vmem:[#allocation10 + $0x318] ss:$12 sps:$4 sm:$0xff]  }
 0x1c8   :  { %4455 = vmatprep.subr.bf16.mxu0 %v6377_v16  ;;  %v6408_v16 = vld [vmem:[#allocation10 + $0x1a0] ss:$12 sps:$4 sm:$0xff]  }
 0x1c9   :  { %2390 = vmatpush1.bf16.msra.mxu1 %v6329_v14  ;;  %v6404_v14 = vld [vmem:[#allocation10 + $0x260] ss:$12 sps:$4 sm:$0xff]  }
 0x1ca   :  { %2391 = vmatprep.subr.bf16.mxu1 %v6337_v7  ;;  %v6407_v7 = vld [vmem:[#allocation10 + $0x334] ss:$12 sps:$4 sm:$0xff]  }
 0x1cb   :  { %4456 = vmatpush1.bf16.msra.mxu0 %v6375_v63  ;;  %v7000_v63 = vld [vmem:[#allocation9 + $0x8] sm:$0xf] }
 0x1cc   :  { %4457 = vmatprep.subr.bf16.mxu0 %v6382_v20  ;;  %v6412_v20 = vld [vmem:[#allocation10 + $0x34c] ss:$12 sps:$4 sm:$0xff]  }
 0x1cd   :  { %2392 = vmatpush1.bf16.msra.mxu1 %v6335_v17  ;;  %v6409_v17 = vld [vmem:[#allocation10 + $0x278] ss:$12 sps:$4 sm:$0xff]  }
 0x1ce   :  { %2393 = vmatprep.subr.bf16.mxu1 %v6343_v19  ;;  %v6405_v19 = vld [vmem:[#allocation10 + $0x330] ss:$12 sps:$4 sm:$0xff]  }
 0x1cf   :  { %4458 = vmatpush1.bf16.msra.mxu0 %v6380_v22  ;;  %v429_v22 = vrot.slane %v7000_v63, %v6959_v44 }
 0x1d0   :  { %4459 = vmatprep.subr.bf16.mxu0 %v6387_v24  ;;  %v6410_v24 = vld [vmem:[#allocation10 + $0x348] ss:$12 sps:$4 sm:$0xff]  }
 0x1d1   :  { %2394 = vmatpush1.bf16.msra.mxu1 %v6341_v21  ;;  %v6413_v21 = vld [vmem:[#allocation10 + $0x1b8] ss:$12 sps:$4 sm:$0xff]  }
 0x1d2   :  { %2395 = vmatprep.subr.bf16.mxu1 %v6349_v23  ;;  %v433_v23 = vrot.slane %v7000_v63, %v6962_v45 }
 0x1d3   :  { %4460 = vmatpush1.bf16.msra.mxu0 %v6385_v25  ;;  %v6417_v25 = vld [vmem:[#allocation10 + $0x364] ss:$12 sps:$4 sm:$0xff]  }
 0x1d4   :  { %4461 = vmatprep.subr.bf16.mxu0 %v6392_v27  ;;  %v6418_v27 = vld [vmem:[#allocation10 + $0x1d0] ss:$12 sps:$4 sm:$0xff]  }
 0x1d5   :  { %2396 = vmatpush1.bf16.msra.mxu1 %v6347_v26 }
 0x1d6   :  { %2397 = vmatprep.subr.bf16.mxu1 %v6355_v29 }
 0x1d7   :  { %4462 = vmatpush1.bf16.msra.mxu0 %v6390_v30 }
 0x1d8   :  { %4474 = vmatprep.subr.bf16.mxu0 %v6397_v32 }
 0x1d9   :  { %2398 = vmatpush1.bf16.msra.mxu1 %v6353_v31  ;;  %v6419_v31 = vld [vmem:[#allocation10 + $0x2a8] ss:$12 sps:$4 sm:$0xff]  }
 0x1da   :  { %5634 = vmatprep.subr.bf16.mxu1 %v6359_v33 }
 0x1dc   :  { %2416 = vmatmul.mubr.bf16.vlgmr.msra.gmra.mrb[12].mxu1 %v6949_v34  ;;  %v408_v34 = vsub.s32 3, %v6954_v40 }
 0x1dd   :  { %5635 = vmatpush3.bf16.msra.mxu1 %v6363_v35  ;;  %4678 = vmatprep.mubr.bf16.mxu1 %v6970_v18  ;;  %v6384_v18 = vld [vmem:[#allocation10 + $0x140] ss:$12 sps:$4 sm:$0xff]  }
 0x1de   :  { %5636 = vmatprep.subr.bf16.mxu1 %v6364_v36  ;;  %v409_v50 = vrot.slane %v6956_v43, %v408_v34  ;;  %v6398_v43 = vld [vmem:[#allocation10 + $0xb0] ss:$12 sps:$4 sm:$0xff]   ;;  %v6415_v35 = vld [vmem:[#allocation10 + $0x360] ss:$12 sps:$4 sm:$0xff]  }
 0x1e1   :  { %5637 = vmatpush3.bf16.msra.mxu1 %v6368_v37 }
 0x1e2   :  { %5638 = vmatprep.subr.bf16.mxu1 %v6369_v38 }
 0x1e5   :  { %5639 = vmatpush3.bf16.msra.mxu1 %v6373_v39  ;;  %v6422_v39 = vld [vmem:[#allocation10 + $0x37c] ss:$12 sps:$4 sm:$0xff]  }
 0x1e6   :  { %5640 = vmatprep.subr.bf16.mxu1 %v6374_v41 }
 0x1e9   :  { %5641 = vmatpush3.bf16.msra.mxu1 %v6378_v42 }
 0x1ea   :  { %5642 = vmatprep.subr.bf16.mxu1 %v6379_v6  ;;  %v6423_v6 = vld [vmem:[#allocation10 + $0x1e8] ss:$12 sps:$4 sm:$0xff]  }
 0x1ed   :  { %5643 = vmatpush3.bf16.msra.mxu1 %v6383_v47 }
 0x1ee   :  { %5644 = vmatprep.subr.bf16.mxu1 %v6384_v18  ;;  %v6424_v18 = vld [vmem:[#allocation10 + $0x2c0] ss:$12 sps:$4 sm:$0xff]  }
 0x1ef   :  { %v2073_v54 = vpop.f32.mrb[4].mxu1 }
 0x1f0   :  { %v5770_v55 = vadd.f32 %v2073_v54, %v405_v48  ;;  %v2075_v56 = vpop.f32.mrb[5].mxu1 }
 0x1f1   :  { %v5771_v58 = vadd.f32 %v2075_v56, %v409_v50  ;;  %v2077_v59 = vpop.f32.mrb[6].mxu1  ;;  %5645 = vmatpush3.bf16.msra.mxu1 %v6388_v51  ;;  %v6429_v56 = vld [vmem:[#allocation10 + $0x2d8] ss:$12 sps:$4 sm:$0xff]  }
 0x1f2   :  { %v5772_v61 = vadd.f32 %v2077_v59, %v405_v48  ;;  %v2079_v62 = vpop.f32.mrb[7].mxu1  ;;  %5646 = vmatprep.subr.bf16.mxu1 %v6389_v53  ;;  %v2428_v2 = vmax.f32 %v5770_v55, 0.0  ;;  %v6427_v53 = vld [vmem:[#allocation10 + $0x394] ss:$12 sps:$4 sm:$0xff]   ;;  %v6432_v59 = vld [vmem:[#allocation10 + $0x3ac] ss:$12 sps:$4 sm:$0xff]  }
 0x1f3   :  { %v5773_v1 = vadd.f32 %v2079_v62, %v409_v50  ;;  %v2429_v4 = vmax.f32 %v5771_v58, 0.0  ;;  %v6420_v50 = vld [vmem:[#allocation10 + $0x378] ss:$12 sps:$4 sm:$0xff]   ;;  %v6428_v55 = vld [vmem:[#allocation10 + $0x200] ss:$12 sps:$4 sm:$0xff]  }
 0x1f4   :  { %v2440_v3 = vmax.f32 %v5772_v61, 0.0  ;;  %v6425_v58 = vld [vmem:[#allocation10 + $0x390] ss:$12 sps:$4 sm:$0xff]   ;;  %v6430_v62 = vld [vmem:[#allocation10 + $0x3a8] ss:$12 sps:$4 sm:$0xff]  }
 0x1f5   :  { %v2441_v5 = vmax.f32 %v5773_v1, 0.0  ;;  %5647 = vmatpush3.bf16.msra.mxu1 %v6393_v60  ;;  %v6433_v60 = vld [vmem:[#allocation10 + $0x218] ss:$12 sps:$4 sm:$0xff]   ;;  %v6434_v61 = vld [vmem:[#allocation10 + $0x2f0] ss:$12 sps:$4 sm:$0xff]  }
 0x1f6   :  { %v6995_v8 = vpack.c.bf16 %v2440_v3, %v2428_v2  ;;  %5648 = vmatprep.subr.bf16.mxu1 %v6394_v0  ;;  %v2331_v26 = vpop.f32.mrb[4].mxu0  ;;  %v6437_v0 = vld [vmem:[#allocation10 + $0x3c4] ss:$12 sps:$4 sm:$0xff]   ;;  %v6439_v2 = vld [vmem:[#allocation10 + $0x3c8] ss:$12 sps:$4 sm:$0xff]  }
 0x1f7   :  { %v2459_v10 = vpack.c.bf16 %v2441_v5, %v2429_v4  ;;  %v5782_v29 = vadd.f32 %v2331_v26, %v429_v22  ;;  %v2333_v30 = vpop.f32.mrb[5].mxu0  ;;  %v6438_v1 = vld [vmem:[#allocation10 + $0x230] ss:$12 sps:$4 sm:$0xff]   ;;  %v6435_v3 = vld [vmem:[#allocation10 + $0x3c0] ss:$12 sps:$4 sm:$0xff]  }
 0x1f8   :  { %v5783_v32 = vadd.f32 %v2333_v30, %v433_v23  ;;  %v2335_v33 = vpop.f32.mrb[6].mxu0  ;;  %v6442_v4 = vld [vmem:[#allocation10 + $0x3dc] ss:$12 sps:$4 sm:$0xff]  }
 0x1f9   :  { %4463 = vmatprep.mubr.bf16.mxu0 %v2459_v10  ;;  %5649 = vmatpush3.bf16.msra.mxu1 %v6398_v43  ;;  %v2434_v36 = vmax.f32 %v5782_v29, 0.0  ;;  %v5784_v37 = vadd.f32 %v2335_v33, %v429_v22  ;;  %v2337_v38 = vpop.f32.mrb[7].mxu0  ;;  %v6443_v5 = vld [vmem:[#allocation10 + $0x308] ss:$12 sps:$4 sm:$0xff]   ;;  %v6444_v43 = vld [vmem:[#allocation10 + $0x3e0] ss:$12 sps:$4 sm:$0xff]  }
 0x1fa   :  { %4464 = vmatmul.mubr.bf16.vlgmr.msra.gmra.mrb[8].mxu0 %v6995_v8  ;;  %5656 = vmatprep.subr.bf16.mxu1 %v6399_v9  ;;  %v2435_v41 = vmax.f32 %v5783_v32, 0.0  ;;  %v5785_v42 = vadd.f32 %v2337_v38, %v433_v23  ;;  %v6440_v9 = vld [vmem:[#allocation10 + $0x3d8] ss:$12 sps:$4 sm:$0xff]   ;;  %v6464_v22 = vld [vmem:[#allocation10 + $0x440] ss:$12 sps:$4 sm:$0xff]  }
 0x1fb   :  { %4475 = vmatpush1.bf16.msra.mxu0 %v6395_v11  ;;  %4506 = vmatprep.mubr.bf16.mxu0 %v6980_v52  ;;  %v2446_v47 = vmax.f32 %v5784_v37, 0.0  ;;  %v6448_v11 = vld [vmem:[#allocation10 + $0x320] ss:$12 sps:$4 sm:$0xff]   ;;  %v6465_v26 = vld [vmem:[#allocation10 + $0x450] ss:$12 sps:$4 sm:$0xff]  }
 0x1fc   :  { %4679 = vmatmul.mubr.bf16.vlgmr.msra.gmra.mrb[16].mxu1 %v6968_v57  ;;  %4476 = vmatprep.subr.bf16.mxu0 %v6402_v12  ;;  %v6414_v57 = vld [vmem:[#allocation10 + $0x290] ss:$12 sps:$4 sm:$0xff]   ;;  %v2447_v48 = vmax.f32 %v5785_v42, 0.0  ;;  %v6449_v12 = vld [vmem:[#allocation10 + $0x3f8] ss:$12 sps:$4 sm:$0xff]  }
 0x1fd   :  { %5657 = vmatpush3.bf16.msra.mxu1 %v6403_v13  ;;  %4719 = vmatprep.mubr.bf16.mxu1 %v2459_v10  ;;  %v7006_v51 = vpack.c.bf16 %v2446_v47, %v2434_v36  ;;  %v6447_v10 = vld [vmem:[#allocation10 + $0x3f4] ss:$12 sps:$4 sm:$0xff]   ;;  %v6445_v13 = vld [vmem:[#allocation10 + $0x3f0] ss:$12 sps:$4 sm:$0xff]   ;;  %v6473_v29 = vld [vmem:[#allocation10 + $0x398] ss:$12 sps:$4 sm:$0xff]  }
 0x1fe   :  { %5658 = vmatprep.subr.bf16.mxu1 %v6404_v14  ;;  %v7008_v54 = vpack.c.bf16 %v2447_v48, %v2435_v41  ;;  %v6452_v14 = vld [vmem:[#allocation10 + $0x40c] ss:$12 sps:$4 sm:$0xff]   ;;  %v6467_v23 = vld [vmem:[#allocation10 + $0x454] ss:$12 sps:$4 sm:$0xff]   ;;  %v6474_v30 = vld [vmem:[#allocation10 + $0x470] ss:$12 sps:$4 sm:$0xff]  }
 0x1ff   :  { %4477 = vmatpush1.bf16.msra.mxu0 %v6400_v15  ;;  %v6453_v15 = vld [vmem:[#allocation10 + $0x338] ss:$12 sps:$4 sm:$0xff]   ;;  %v6478_v33 = vld [vmem:[#allocation10 + $0x3b0] ss:$12 sps:$4 sm:$0xff]   ;;  %v6475_v36 = vld [vmem:[#allocation10 + $0x480] ss:$12 sps:$4 sm:$0xff]  }
 0x200   :  { %4478 = vmatprep.subr.bf16.mxu0 %v6407_v7  ;;  %v6454_v7 = vld [vmem:[#allocation10 + $0x410] ss:$12 sps:$4 sm:$0xff]   ;;  %v6483_v38 = vld [vmem:[#allocation10 + $0x488] ss:$12 sps:$4 sm:$0xff]   ;;  %v6480_v41 = vld [vmem:[#allocation10 + $0x498] ss:$12 sps:$4 sm:$0xff]  }
 0x201   :  { %5659 = vmatpush3.bf16.msra.mxu1 %v6408_v16  ;;  %v6450_v16 = vld [vmem:[#allocation10 + $0x408] ss:$12 sps:$4 sm:$0xff]   ;;  %v6477_v32 = vld [vmem:[#allocation10 + $0x484] ss:$12 sps:$4 sm:$0xff]   ;;  %v6492_v48 = vld [vmem:[#allocation10 + $0x4cc] ss:$12 sps:$4 sm:$0xff]  }
 0x202   :  { %5660 = vmatprep.subr.bf16.mxu1 %v6409_v17  ;;  %v6458_v17 = vld [vmem:[#allocation10 + $0x350] ss:$12 sps:$4 sm:$0xff]   ;;  %v6487_v42 = vld [vmem:[#allocation10 + $0x4b4] ss:$12 sps:$4 sm:$0xff]   ;;  %v6489_v47 = vld [vmem:[#allocation10 + $0x578] ss:$12 sps:$4 sm:$0xff]  }
 0x203   :  { %4479 = vmatpush1.bf16.msra.mxu0 %v6405_v19  ;;  %v6459_v19 = vld [vmem:[#allocation10 + $0x428] ss:$12 sps:$4 sm:$0xff]  }
 0x204   :  { %4480 = vmatprep.subr.bf16.mxu0 %v6412_v20  ;;  %v6462_v20 = vld [vmem:[#allocation10 + $0x43c] ss:$12 sps:$4 sm:$0xff]  }
 0x205   :  { %5661 = vmatpush3.bf16.msra.mxu1 %v6413_v21  ;;  %v6463_v21 = vld [vmem:[#allocation10 + $0x368] ss:$12 sps:$4 sm:$0xff]  }
 0x206   :  { %5662 = vmatprep.subr.bf16.mxu1 %v6414_v57  ;;  %v6460_v57 = vld [vmem:[#allocation10 + $0x438] ss:$12 sps:$4 sm:$0xff]   ;;  %v6482_v37 = vld [vmem:[#allocation10 + $0x49c] ss:$12 sps:$4 sm:$0xff]  }
 0x207   :  { %4481 = vmatpush1.bf16.msra.mxu0 %v6410_v24  ;;  %v6468_v24 = vld [vmem:[#allocation10 + $0x380] ss:$12 sps:$4 sm:$0xff]  }
 0x208   :  { %4482 = vmatprep.subr.bf16.mxu0 %v6417_v25  ;;  %v6469_v25 = vld [vmem:[#allocation10 + $0x458] ss:$12 sps:$4 sm:$0xff]  }
 0x209   :  { %5663 = vmatpush3.bf16.msra.mxu1 %v6418_v27  ;;  %v6472_v27 = vld [vmem:[#allocation10 + $0x46c] ss:$12 sps:$4 sm:$0xff]  }
 0x20a   :  { %5664 = vmatprep.subr.bf16.mxu1 %v6419_v31  ;;  %v6470_v31 = vld [vmem:[#allocation10 + $0x468] ss:$12 sps:$4 sm:$0xff]  }
 0x20b   :  { %4483 = vmatpush1.bf16.msra.mxu0 %v6415_v35  ;;  %v6479_v35 = vld [vmem:[#allocation10 + $0x548] ss:$12 sps:$4 sm:$0xff]  }
 0x20c   :  { %4484 = vmatprep.subr.bf16.mxu0 %v6422_v39  ;;  %v6484_v39 = vld [vmem:[#allocation10 + $0x560] ss:$12 sps:$4 sm:$0xff]  }
 0x20d   :  { %5665 = vmatpush3.bf16.msra.mxu1 %v6423_v6  ;;  %v6488_v6 = vld [vmem:[#allocation10 + $0x4a0] ss:$12 sps:$4 sm:$0xff]  }
 0x20e   :  { %5666 = vmatprep.subr.bf16.mxu1 %v6424_v18  ;;  %v6485_v18 = vld [vmem:[#allocation10 + $0x4b0] ss:$12 sps:$4 sm:$0xff]  }
 0x20f   :  { %4485 = vmatpush1.bf16.msra.mxu0 %v6420_v50  ;;  %v6493_v50 = vld [vmem:[#allocation10 + $0x4b8] ss:$12 sps:$4 sm:$0xff]  }
 0x210   :  { %4486 = vmatprep.subr.bf16.mxu0 %v6427_v53  ;;  %v6494_v53 = vld [vmem:[#allocation10 + $0x590] ss:$12 sps:$4 sm:$0xff]  }
 0x211   :  { %5667 = vmatpush3.bf16.msra.mxu1 %v6428_v55  ;;  %v6490_v55 = vld [vmem:[#allocation10 + $0x4c8] ss:$12 sps:$4 sm:$0xff]  }
 0x212   :  { %5668 = vmatprep.subr.bf16.mxu1 %v6429_v56  ;;  %v6497_v56 = vld [vmem:[#allocation10 + $0x4e4] ss:$12 sps:$4 sm:$0xff]  }
 0x213   :  { %4487 = vmatpush1.bf16.msra.mxu0 %v6425_v58  ;;  %v6499_v58 = vld [vmem:[#allocation10 + $0x5a8] ss:$12 sps:$4 sm:$0xff]  }
 0x214   :  { %4488 = vmatprep.subr.bf16.mxu0 %v6432_v59  ;;  %v6495_v59 = vld [vmem:[#allocation10 + $0x4e0] ss:$12 sps:$4 sm:$0xff]  }
 0x215   :  { %5669 = vmatpush3.bf16.msra.mxu1 %v6433_v60  ;;  %v6502_v60 = vld [vmem:[#allocation10 + $0x4fc] ss:$12 sps:$4 sm:$0xff]  }
 0x216   :  { %5670 = vmatprep.subr.bf16.mxu1 %v6434_v61  ;;  %v420_v61 = vsub.s32 6, %v6954_v40 }
 0x217   :  { %4489 = vmatpush1.bf16.msra.mxu0 %v6430_v62  ;;  %v6503_v62 = vld [vmem:[#allocation10 + $0x4e8] ss:$12 sps:$4 sm:$0xff]  }
 0x218   :  { %4490 = vmatprep.subr.bf16.mxu0 %v6437_v0  ;;  %v424_v0 = vsub.s32 7, %v6954_v40 }
 0x219   :  { %5671 = vmatpush3.bf16.msra.mxu1 %v6438_v1  ;;  %v6504_v1 = vld [vmem:[#allocation10 + $0x5c0] ss:$12 sps:$4 sm:$0xff]  }
 0x21a   :  { %5678 = vmatprep.subr.bf16.mxu1 %v6439_v2  ;;  %v6500_v2 = vld [vmem:[#allocation10 + $0x4f8] ss:$12 sps:$4 sm:$0xff]  }
 0x21b   :  { %4491 = vmatpush1.bf16.msra.mxu0 %v6435_v3  ;;  %v6671_v3 = vld [vmem:[#allocation9] sm:$0xff] }
 0x21c   :  { %4720 = vmatmul.mubr.bf16.vlgmr.msra.gmra.mrb[20].mxu1 %v6995_v8  ;;  %4492 = vmatprep.subr.bf16.mxu0 %v6442_v4  ;;  %v6457_v8 = vld [vmem:[#allocation10 + $0x424] ss:$12 sps:$4 sm:$0xff]   ;;  %v421_v4 = vrot.slane %v6671_v3, %v420_v61  ;;  %v6548_v61 = vld [vmem:[#allocation10 + $0x680] ss:$12 sps:$4 sm:$0xff]  }
 0x21d   :  { %5679 = vmatpush3.bf16.msra.mxu1 %v6443_v5  ;;  %4760 = vmatprep.mubr.bf16.mxu1 %v6980_v52  ;;  %v6455_v52 = vld [vmem:[#allocation10 + $0x420] ss:$12 sps:$4 sm:$0xff]  }
 0x21e   :  { %5680 = vmatprep.subr.bf16.mxu1 %v6444_v43  ;;  %v6507_v5 = vld [vmem:[#allocation10 + $0x514] ss:$12 sps:$4 sm:$0xff]   ;;  %v425_v43 = vrot.slane %v6671_v3, %v424_v0  ;;  %v6545_v0 = vld [vmem:[#allocation10 + $0x5d0] ss:$12 sps:$4 sm:$0xff]  }
 0x21f   :  { %4493 = vmatpush1.bf16.msra.mxu0 %v6440_v9  ;;  %v6508_v9 = vld [vmem:[#allocation10 + $0x500] ss:$12 sps:$4 sm:$0xff]   ;;  %v6554_v3 = vld [vmem:[#allocation10 + $0x770] ss:$12 sps:$4 sm:$0xff]  }
 0x220   :  { %4494 = vmatprep.subr.bf16.mxu0 %v6447_v10  ;;  %v6509_v10 = vld [vmem:[#allocation10 + $0x5d8] ss:$12 sps:$4 sm:$0xff]  }
 0x221   :  { %5681 = vmatpush3.bf16.msra.mxu1 %v6448_v11 }
 0x222   :  { %5682 = vmatprep.subr.bf16.mxu1 %v6449_v12  ;;  %v6505_v12 = vld [vmem:[#allocation10 + $0x510] ss:$12 sps:$4 sm:$0xff]  }
 0x223   :  { %4495 = vmatpush1.bf16.msra.mxu0 %v6445_v13 }
 0x224   :  { %4496 = vmatprep.subr.bf16.mxu0 %v6452_v14 }
 0x225   :  { %5683 = vmatpush3.bf16.msra.mxu1 %v6453_v15  ;;  %v6512_v15 = vld [vmem:[#allocation10 + $0x52c] ss:$12 sps:$4 sm:$0xff]  }
 0x226   :  { %5684 = vmatprep.subr.bf16.mxu1 %v6454_v7 }
 0x227   :  { %4497 = vmatpush1.bf16.msra.mxu0 %v6450_v16 }
 0x228   :  { %4498 = vmatprep.subr.bf16.mxu0 %v6457_v8  ;;  %v6513_v8 = vld [vmem:[#allocation10 + $0x518] ss:$12 sps:$4 sm:$0xff]  }
 0x229   :  { %5685 = vmatpush3.bf16.msra.mxu1 %v6458_v17 }
 0x22a   :  { %5686 = vmatprep.subr.bf16.mxu1 %v6459_v19 }
 0x22b   :  { %4499 = vmatpush1.bf16.msra.mxu0 %v6455_v52 }
 0x22c   :  { %4500 = vmatprep.subr.bf16.mxu0 %v6462_v20  ;;  %v6514_v20 = vld [vmem:[#allocation10 + $0x5f0] ss:$12 sps:$4 sm:$0xff]  }
 0x22d   :  { %5687 = vmatpush3.bf16.msra.mxu1 %v6463_v21 }
 0x22e   :  { %5688 = vmatprep.subr.bf16.mxu1 %v6464_v22  ;;  %v6510_v22 = vld [vmem:[#allocation10 + $0x528] ss:$12 sps:$4 sm:$0xff]  }
 0x22f   :  { %4501 = vmatpush1.bf16.msra.mxu0 %v6460_v57 }
 0x230   :  { %4502 = vmatprep.subr.bf16.mxu0 %v6467_v23  ;;  %v6517_v23 = vld [vmem:[#allocation10 + $0x544] ss:$12 sps:$4 sm:$0xff]  }
 0x231   :  { %5689 = vmatpush3.bf16.msra.mxu1 %v6468_v24 }
 0x232   :  { %5690 = vmatprep.subr.bf16.mxu1 %v6469_v25 }
 0x233   :  { %4503 = vmatpush1.bf16.msra.mxu0 %v6465_v26  ;;  %v6518_v26 = vld [vmem:[#allocation10 + $0x530] ss:$12 sps:$4 sm:$0xff]  }
 0x234   :  { %4504 = vmatprep.subr.bf16.mxu0 %v6472_v27 }
 0x235   :  { %5691 = vmatpush3.bf16.msra.mxu1 %v6473_v29  ;;  %v6519_v29 = vld [vmem:[#allocation10 + $0x6c8] ss:$12 sps:$4 sm:$0xff]  }
 0x236   :  { %5692 = vmatprep.subr.bf16.mxu1 %v6474_v30 }
 0x237   :  { %4505 = vmatpush1.bf16.msra.mxu0 %v6470_v31  ;;  %v6515_v31 = vld [vmem:[#allocation10 + $0x540] ss:$12 sps:$4 sm:$0xff]  }
 0x238   :  { %4517 = vmatprep.subr.bf16.mxu0 %v6477_v32  ;;  %v6522_v32 = vld [vmem:[#allocation10 + $0x55c] ss:$12 sps:$4 sm:$0xff]  }
 0x239   :  { %5693 = vmatpush3.bf16.msra.mxu1 %v6478_v33  ;;  %v6523_v33 = vld [vmem:[#allocation10 + $0x608] ss:$12 sps:$4 sm:$0xff]  }
 0x23a   :  { %4507 = vmatmul.mubr.bf16.vlgmr.msra.gmra.mrb[8].mxu0 %v6978_v49  ;;  %5700 = vmatprep.subr.bf16.mxu1 %v6479_v35  ;;  %v6524_v35 = vld [vmem:[#allocation10 + $0x6e0] ss:$12 sps:$4 sm:$0xff]  }
 0x23b   :  { %4518 = vmatpush1.bf16.msra.mxu0 %v6475_v36  ;;  %v6520_v36 = vld [vmem:[#allocation10 + $0x558] ss:$12 sps:$4 sm:$0xff]  }
 0x23c   :  { %4761 = vmatmul.mubr.bf16.vlgmr.msra.gmra.mrb[24].mxu1 %v6978_v49  ;;  %4519 = vmatprep.subr.bf16.mxu0 %v6482_v37  ;;  %v6498_v49 = vld [vmem:[#allocation10 + $0x4d0] ss:$12 sps:$4 sm:$0xff]   ;;  %v6527_v37 = vld [vmem:[#allocation10 + $0x574] ss:$12 sps:$4 sm:$0xff]  }
 0x23d   :  { %5701 = vmatpush3.bf16.msra.mxu1 %v6483_v38  ;;  %v6528_v38 = vld [vmem:[#allocation10 + $0x620] ss:$12 sps:$4 sm:$0xff]  }
 0x23e   :  { %5702 = vmatprep.subr.bf16.mxu1 %v6484_v39  ;;  %v6529_v39 = vld [vmem:[#allocation10 + $0x6f8] ss:$12 sps:$4 sm:$0xff]  }
 0x23f   :  { %4520 = vmatpush1.bf16.msra.mxu0 %v6480_v41  ;;  %v6525_v41 = vld [vmem:[#allocation10 + $0x570] ss:$12 sps:$4 sm:$0xff]  }
 0x240   :  { %4521 = vmatprep.subr.bf16.mxu0 %v6487_v42  ;;  %v6532_v42 = vld [vmem:[#allocation10 + $0x58c] ss:$12 sps:$4 sm:$0xff]  }
 0x241   :  { %5703 = vmatpush3.bf16.msra.mxu1 %v6488_v6  ;;  %v6533_v6 = vld [vmem:[#allocation10 + $0x638] ss:$12 sps:$4 sm:$0xff]  }
 0x242   :  { %5704 = vmatprep.subr.bf16.mxu1 %v6489_v47  ;;  %v6534_v47 = vld [vmem:[#allocation10 + $0x710] ss:$12 sps:$4 sm:$0xff]  }
 0x243   :  { %4522 = vmatpush1.bf16.msra.mxu0 %v6485_v18  ;;  %v6530_v18 = vld [vmem:[#allocation10 + $0x588] ss:$12 sps:$4 sm:$0xff]  }
 0x244   :  { %4523 = vmatprep.subr.bf16.mxu0 %v6492_v48  ;;  %v6537_v48 = vld [vmem:[#allocation10 + $0x5a4] ss:$12 sps:$4 sm:$0xff]  }
 0x245   :  { %5705 = vmatpush3.bf16.msra.mxu1 %v6493_v50  ;;  %v6538_v50 = vld [vmem:[#allocation10 + $0x650] ss:$12 sps:$4 sm:$0xff]  }
 0x246   :  { %5706 = vmatprep.subr.bf16.mxu1 %v6494_v53  ;;  %v6539_v53 = vld [vmem:[#allocation10 + $0x728] ss:$12 sps:$4 sm:$0xff]  }
 0x247   :  { %4524 = vmatpush1.bf16.msra.mxu0 %v6490_v55  ;;  %v6535_v55 = vld [vmem:[#allocation10 + $0x5a0] ss:$12 sps:$4 sm:$0xff]  }
 0x248   :  { %4525 = vmatprep.subr.bf16.mxu0 %v6497_v56  ;;  %v6542_v56 = vld [vmem:[#allocation10 + $0x5bc] ss:$12 sps:$4 sm:$0xff]  }
 0x249   :  { %5707 = vmatpush3.bf16.msra.mxu1 %v6498_v49  ;;  %v6543_v49 = vld [vmem:[#allocation10 + $0x668] ss:$12 sps:$4 sm:$0xff]  }
 0x24a   :  { %5708 = vmatprep.subr.bf16.mxu1 %v6499_v58  ;;  %v6544_v58 = vld [vmem:[#allocation10 + $0x740] ss:$12 sps:$4 sm:$0xff]  }
 0x24b   :  { %4526 = vmatpush1.bf16.msra.mxu0 %v6495_v59  ;;  %v6540_v59 = vld [vmem:[#allocation10 + $0x5b8] ss:$12 sps:$4 sm:$0xff]  }
 0x24c   :  { %4527 = vmatprep.subr.bf16.mxu0 %v6502_v60  ;;  %v6547_v60 = vld [vmem:[#allocation10 + $0x5d4] ss:$12 sps:$4 sm:$0xff]  }
 0x24d   :  { %5709 = vmatpush3.bf16.msra.mxu1 %v6503_v62  ;;  %v6549_v62 = vld [vmem:[#allocation10 + $0x758] ss:$12 sps:$4 sm:$0xff]  }
 0x24e   :  { %5710 = vmatprep.subr.bf16.mxu1 %v6504_v1  ;;  %v6552_v1 = vld [vmem:[#allocation10 + $0x5ec] ss:$12 sps:$4 sm:$0xff]  }
 0x24f   :  { %4528 = vmatpush1.bf16.msra.mxu0 %v6500_v2  ;;  %v2245_v11 = vpop.f32.mrb[8].mxu1  ;;  %v6553_v2 = vld [vmem:[#allocation10 + $0x698] ss:$12 sps:$4 sm:$0xff]  }
 0x250   :  { %v5778_v13 = vadd.f32 %v2245_v11, %v421_v4  ;;  %v2247_v14 = vpop.f32.mrb[9].mxu1  ;;  %4529 = vmatprep.subr.bf16.mxu0 %v6507_v5  ;;  %v6557_v5 = vld [vmem:[#allocation10 + $0x604] ss:$12 sps:$4 sm:$0xff]   ;;  %v6561_v11 = vld [vmem:[#allocation10 + $0x61c] ss:$12 sps:$4 sm:$0xff]  }
 0x251   :  { %v5779_v7 = vadd.f32 %v2247_v14, %v425_v43  ;;  %v2249_v16 = vpop.f32.mrb[10].mxu1  ;;  %5711 = vmatpush3.bf16.msra.mxu1 %v6508_v9  ;;  %v6583_v9 = vld [vmem:[#allocation10 + $0x848] ss:$12 sps:$4 sm:$0xff]   ;;  %v6559_v14 = vld [vmem:[#allocation10 + $0x618] ss:$12 sps:$4 sm:$0xff]  }
 0x252   :  { %v2432_v17 = vmax.f32 %v5778_v13, 0.0  ;;  %v5780_v19 = vadd.f32 %v2249_v16, %v421_v4  ;;  %v2251_v52 = vpop.f32.mrb[11].mxu1  ;;  %5712 = vmatprep.subr.bf16.mxu1 %v6509_v10  ;;  %v6550_v4 = vld [vmem:[#allocation10 + $0x5e8] ss:$12 sps:$4 sm:$0xff]   ;;  %v6555_v10 = vld [vmem:[#allocation10 + $0x600] ss:$12 sps:$4 sm:$0xff]  }
 0x253   :  { %v5781_v21 = vadd.f32 %v2251_v52, %v425_v43  ;;  %4530 = vmatpush1.bf16.msra.mxu0 %v6505_v12  ;;  %v2433_v24 = vmax.f32 %v5779_v7, 0.0  ;;  %v6558_v43 = vld [vmem:[#allocation10 + $0x6b0] ss:$12 sps:$4 sm:$0xff]   ;;  %v6584_v12 = vld [vmem:[#allocation10 + $0x788] ss:$12 sps:$4 sm:$0xff]  }
 0x254   :  { %v2444_v57 = vmax.f32 %v5780_v19, 0.0  ;;  %4531 = vmatprep.subr.bf16.mxu0 %v6512_v15  ;;  %v6588_v13 = vld [vmem:[#allocation10 + $0x860] ss:$12 sps:$4 sm:$0xff]   ;;  %v6593_v16 = vld [vmem:[#allocation10 + $0x878] ss:$12 sps:$4 sm:$0xff]  }
 0x255   :  { %v2445_v25 = vmax.f32 %v5781_v21, 0.0  ;;  %5713 = vmatpush3.bf16.msra.mxu1 %v6513_v8  ;;  %v6564_v15 = vld [vmem:[#allocation10 + $0x634] ss:$12 sps:$4 sm:$0xff]   ;;  %v6562_v8 = vld [vmem:[#allocation10 + $0x630] ss:$12 sps:$4 sm:$0xff]  }
 0x256   :  { %v7016_v27 = vpack.c.bf16 %v2444_v57, %v2432_v17  ;;  %5714 = vmatprep.subr.bf16.mxu1 %v6514_v20  ;;  %v6589_v7 = vld [vmem:[#allocation10 + $0x7a0] ss:$12 sps:$4 sm:$0xff]   ;;  %v6594_v19 = vld [vmem:[#allocation10 + $0x7b8] ss:$12 sps:$4 sm:$0xff]   ;;  %v6598_v52 = vld [vmem:[#allocation10 + $0x890] ss:$12 sps:$4 sm:$0xff]  }
 0x257   :  { %v2463_v30 = vpack.c.bf16 %v2445_v25, %v2433_v24  ;;  %4532 = vmatpush1.bf16.msra.mxu0 %v6510_v22  ;;  %v6567_v17 = vld [vmem:[#allocation10 + $0x64c] ss:$12 sps:$4 sm:$0xff]   ;;  %v6565_v20 = vld [vmem:[#allocation10 + $0x648] ss:$12 sps:$4 sm:$0xff]   ;;  %v6599_v21 = vld [vmem:[#allocation10 + $0x7d0] ss:$12 sps:$4 sm:$0xff]  }
 0x258   :  { %4533 = vmatprep.subr.bf16.mxu0 %v6517_v23  ;;  %v6603_v22 = vld [vmem:[#allocation10 + $0x8a8] ss:$12 sps:$4 sm:$0xff]   ;;  %v6568_v57 = vld [vmem:[#allocation10 + $0x660] ss:$12 sps:$4 sm:$0xff]  }
 0x259   :  { %4549 = vmatprep.mubr.bf16.mxu0 %v2463_v30  ;;  %5715 = vmatpush3.bf16.msra.mxu1 %v6518_v26  ;;  %v6573_v23 = vld [vmem:[#allocation10 + $0x67c] ss:$12 sps:$4 sm:$0xff]   ;;  %v6608_v25 = vld [vmem:[#allocation10 + $0x8c0] ss:$12 sps:$4 sm:$0xff]   ;;  %v6571_v26 = vld [vmem:[#allocation10 + $0x678] ss:$12 sps:$4 sm:$0xff]  }
 0x25a   :  { %4801 = vmatprep.mubr.bf16.mxu1 %v2463_v30  ;;  %5722 = vmatprep.subr.bf16.mxu1 %v6519_v29  ;;  %v6604_v24 = vld [vmem:[#allocation10 + $0x7e8] ss:$12 sps:$4 sm:$0xff]   ;;  %v6609_v29 = vld [vmem:[#allocation10 + $0x800] ss:$12 sps:$4 sm:$0xff]   ;;  %v6613_v30 = vld [vmem:[#allocation10 + $0x8d8] ss:$12 sps:$4 sm:$0xff]  }
 0x25b   :  { %4534 = vmatpush1.bf16.msra.mxu0 %v6515_v31  ;;  %v6574_v31 = vld [vmem:[#allocation10 + $0x690] ss:$12 sps:$4 sm:$0xff]  }
 0x25c   :  { %4802 = vmatmul.mubr.bf16.vlgmr.msra.gmra.mrb[28].mxu1 %v7016_v27  ;;  %4535 = vmatprep.subr.bf16.mxu0 %v6522_v32  ;;  %v6579_v32 = vld [vmem:[#allocation10 + $0x6ac] ss:$12 sps:$4 sm:$0xff]  }
 0x25d   :  { %5723 = vmatpush3.bf16.msra.mxu1 %v6523_v33  ;;  %4842 = vmatprep.mubr.bf16.mxu1 %v7008_v54  ;;  %v6614_v33 = vld [vmem:[#allocation10 + $0x818] ss:$12 sps:$4 sm:$0xff]  }
 0x25e   :  { %5724 = vmatprep.subr.bf16.mxu1 %v6524_v35  ;;  %v6618_v35 = vld [vmem:[#allocation10 + $0x8f0] ss:$12 sps:$4 sm:$0xff]  }
 0x25f   :  { %4536 = vmatpush1.bf16.msra.mxu0 %v6520_v36  ;;  %v6577_v36 = vld [vmem:[#allocation10 + $0x6a8] ss:$12 sps:$4 sm:$0xff]  }
 0x260   :  { %4537 = vmatprep.subr.bf16.mxu0 %v6527_v37  ;;  %v6582_v37 = vld [vmem:[#allocation10 + $0x6c4] ss:$12 sps:$4 sm:$0xff]  }
 0x261   :  { %5725 = vmatpush3.bf16.msra.mxu1 %v6528_v38  ;;  %v6619_v38 = vld [vmem:[#allocation10 + $0x830] ss:$12 sps:$4 sm:$0xff]  }
 0x262   :  { %5726 = vmatprep.subr.bf16.mxu1 %v6529_v39  ;;  %v6580_v39 = vld [vmem:[#allocation10 + $0x6c0] ss:$12 sps:$4 sm:$0xff]  }
 0x263   :  { %4538 = vmatpush1.bf16.msra.mxu0 %v6525_v41  ;;  %v6587_v41 = vld [vmem:[#allocation10 + $0x6dc] ss:$12 sps:$4 sm:$0xff]  }
 0x264   :  { %4539 = vmatprep.subr.bf16.mxu0 %v6532_v42  ;;  %v6585_v42 = vld [vmem:[#allocation10 + $0x6d8] ss:$12 sps:$4 sm:$0xff]  }
 0x265   :  { %5727 = vmatpush3.bf16.msra.mxu1 %v6533_v6  ;;  %v6592_v6 = vld [vmem:[#allocation10 + $0x6f4] ss:$12 sps:$4 sm:$0xff]  }
 0x266   :  { %5728 = vmatprep.subr.bf16.mxu1 %v6534_v47  ;;  %v6590_v47 = vld [vmem:[#allocation10 + $0x6f0] ss:$12 sps:$4 sm:$0xff]  }
 0x267   :  { %4540 = vmatpush1.bf16.msra.mxu0 %v6530_v18  ;;  %v6597_v18 = vld [vmem:[#allocation10 + $0x70c] ss:$12 sps:$4 sm:$0xff]  }
 0x268   :  { %4541 = vmatprep.subr.bf16.mxu0 %v6537_v48  ;;  %v6595_v48 = vld [vmem:[#allocation10 + $0x708] ss:$12 sps:$4 sm:$0xff]  }
 0x269   :  { %5729 = vmatpush3.bf16.msra.mxu1 %v6538_v50  ;;  %v6602_v50 = vld [vmem:[#allocation10 + $0x724] ss:$12 sps:$4 sm:$0xff]  }
 0x26a   :  { %5730 = vmatprep.subr.bf16.mxu1 %v6539_v53  ;;  %v6600_v53 = vld [vmem:[#allocation10 + $0x720] ss:$12 sps:$4 sm:$0xff]  }
 0x26b   :  { %4542 = vmatpush1.bf16.msra.mxu0 %v6535_v55  ;;  %v6607_v55 = vld [vmem:[#allocation10 + $0x73c] ss:$12 sps:$4 sm:$0xff]  }
 0x26c   :  { %4543 = vmatprep.subr.bf16.mxu0 %v6542_v56  ;;  %v6605_v56 = vld [vmem:[#allocation10 + $0x738] ss:$12 sps:$4 sm:$0xff]  }
 0x26d   :  { %5731 = vmatpush3.bf16.msra.mxu1 %v6543_v49  ;;  %v437_v49 = vrot.slane %v7000_v63, %v6987_v46 }
 0x26e   :  { %5732 = vmatprep.subr.bf16.mxu1 %v6544_v58  ;;  %v6612_v58 = vld [vmem:[#allocation10 + $0x754] ss:$12 sps:$4 sm:$0xff]  }
 0x26f   :  { %4544 = vmatpush1.bf16.msra.mxu0 %v6540_v59  ;;  %v441_v59 = vrot.slane %v7000_v63, %v408_v34 }
 0x270   :  { %4545 = vmatprep.subr.bf16.mxu0 %v6547_v60 }
 0x271   :  { %5733 = vmatpush3.bf16.msra.mxu1 %v6548_v61  ;;  %v6610_v61 = vld [vmem:[#allocation10 + $0x750] ss:$12 sps:$4 sm:$0xff]  }
 0x272   :  { %5734 = vmatprep.subr.bf16.mxu1 %v6549_v62 }
 0x273   :  { %4546 = vmatpush1.bf16.msra.mxu0 %v6545_v0 }
 0x274   :  { %4547 = vmatprep.subr.bf16.mxu0 %v6552_v1  ;;  %v6617_v1 = vld [vmem:[#allocation10 + $0x76c] ss:$12 sps:$4 sm:$0xff]  }
 0x275   :  { %5735 = vmatpush3.bf16.msra.mxu1 %v6553_v2 }
 0x276   :  { %5736 = vmatprep.subr.bf16.mxu1 %v6554_v3 }
 0x277   :  { %4548 = vmatpush1.bf16.msra.mxu0 %v6550_v4 }
 0x278   :  { %4560 = vmatprep.subr.bf16.mxu0 %v6557_v5 }
 0x279   :  { %5737 = vmatpush3.bf16.msra.mxu1 %v6558_v43 }
 0x27a   :  { %4550 = vmatmul.mubr.bf16.vlgmr.msra.gmra.mrb[8].mxu0 %v7016_v27  ;;  %5744 = vmatprep.subr.bf16.mxu1 %v6583_v9  ;;  %v6576_v27 = vld [vmem:[#allocation10 + $0x694] ss:$12 sps:$4 sm:$0xff]  }
 0x27b   :  { %4561 = vmatpush1.bf16.msra.mxu0 %v6555_v10  ;;  %4592 = vmatprep.mubr.bf16.mxu0 %v7008_v54  ;;  %v6570_v54 = vld [vmem:[#allocation10 + $0x664] ss:$12 sps:$4 sm:$0xff]  }
 0x27c   :  { %4843 = vmatmul.mubr.bf16.vlgmr.msra.gmra.mrb[32].mxu1 %v7006_v51  ;;  %4562 = vmatprep.subr.bf16.mxu0 %v6561_v11  ;;  %v6615_v11 = vld [vmem:[#allocation10 + $0x768] ss:$12 sps:$4 sm:$0xff]  }
 0x27d   :  { %5745 = vmatpush3.bf16.msra.mxu1 %v6584_v12 }
 0x27e   :  { %5746 = vmatprep.subr.bf16.mxu1 %v6588_v13  ;;  %v6622_v13 = vld [vmem:[#allocation10 + $0x784] ss:$12 sps:$4 sm:$0xff]  }
 0x27f   :  { %4563 = vmatpush1.bf16.msra.mxu0 %v6559_v14 }
 0x280   :  { %4564 = vmatprep.subr.bf16.mxu0 %v6564_v15  ;;  %v6620_v15 = vld [vmem:[#allocation10 + $0x780] ss:$12 sps:$4 sm:$0xff]  }
 0x281   :  { %5747 = vmatpush3.bf16.msra.mxu1 %v6589_v7  ;;  %v6625_v7 = vld [vmem:[#allocation10 + $0x79c] ss:$12 sps:$4 sm:$0xff]  }
 0x282   :  { %5748 = vmatprep.subr.bf16.mxu1 %v6593_v16  ;;  %v6623_v16 = vld [vmem:[#allocation10 + $0x798] ss:$12 sps:$4 sm:$0xff]  }
 0x283   :  { %4565 = vmatpush1.bf16.msra.mxu0 %v6562_v8  ;;  %v6628_v8 = vld [vmem:[#allocation10 + $0x7b4] ss:$12 sps:$4 sm:$0xff]  }
 0x284   :  { %4566 = vmatprep.subr.bf16.mxu0 %v6567_v17  ;;  %v6626_v17 = vld [vmem:[#allocation10 + $0x7b0] ss:$12 sps:$4 sm:$0xff]  }
 0x285   :  { %5749 = vmatpush3.bf16.msra.mxu1 %v6594_v19  ;;  %v6631_v19 = vld [vmem:[#allocation10 + $0x7cc] ss:$12 sps:$4 sm:$0xff]  }
 0x286   :  { %5750 = vmatprep.subr.bf16.mxu1 %v6598_v52  ;;  %v6629_v52 = vld [vmem:[#allocation10 + $0x7c8] ss:$12 sps:$4 sm:$0xff]  }
 0x287   :  { %4567 = vmatpush1.bf16.msra.mxu0 %v6565_v20  ;;  %v6634_v20 = vld [vmem:[#allocation10 + $0x7e4] ss:$12 sps:$4 sm:$0xff]  }
 0x288   :  { %4568 = vmatprep.subr.bf16.mxu0 %v6570_v54  ;;  %v6632_v54 = vld [vmem:[#allocation10 + $0x7e0] ss:$12 sps:$4 sm:$0xff]  }
 0x289   :  { %5751 = vmatpush3.bf16.msra.mxu1 %v6599_v21  ;;  %v6637_v21 = vld [vmem:[#allocation10 + $0x7fc] ss:$12 sps:$4 sm:$0xff]  }
 0x28a   :  { %5752 = vmatprep.subr.bf16.mxu1 %v6603_v22  ;;  %v6640_v22 = vld [vmem:[#allocation10 + $0x814] ss:$12 sps:$4 sm:$0xff]  }
 0x28b   :  { %4569 = vmatpush1.bf16.msra.mxu0 %v6568_v57 }
 0x28c   :  { %4570 = vmatprep.subr.bf16.mxu0 %v6573_v23  ;;  %v6638_v23 = vld [vmem:[#allocation10 + $0x810] ss:$12 sps:$4 sm:$0xff]  }
 0x28d   :  { %5753 = vmatpush3.bf16.msra.mxu1 %v6604_v24 }
 0x28e   :  { %5754 = vmatprep.subr.bf16.mxu1 %v6608_v25  ;;  %v6643_v25 = vld [vmem:[#allocation10 + $0x82c] ss:$12 sps:$4 sm:$0xff]  }
 0x28f   :  { %4571 = vmatpush1.bf16.msra.mxu0 %v6571_v26 }
 0x290   :  { %4572 = vmatprep.subr.bf16.mxu0 %v6576_v27 }
 0x291   :  { %5755 = vmatpush3.bf16.msra.mxu1 %v6609_v29 }
 0x292   :  { %5756 = vmatprep.subr.bf16.mxu1 %v6613_v30 }
 0x293   :  { %4573 = vmatpush1.bf16.msra.mxu0 %v6574_v31  ;;  %v6641_v31 = vld [vmem:[#allocation10 + $0x828] ss:$12 sps:$4 sm:$0xff]  }
 0x294   :  { %4574 = vmatprep.subr.bf16.mxu0 %v6579_v32  ;;  %v6646_v32 = vld [vmem:[#allocation10 + $0x844] ss:$12 sps:$4 sm:$0xff]  }
 0x295   :  { %5757 = vmatpush3.bf16.msra.mxu1 %v6614_v33  ;;  %v6644_v33 = vld [vmem:[#allocation10 + $0x840] ss:$12 sps:$4 sm:$0xff]  }
 0x296   :  { %5758 = vmatprep.subr.bf16.mxu1 %v6618_v35  ;;  %v6649_v35 = vld [vmem:[#allocation10 + $0x85c] ss:$12 sps:$4 sm:$0xff]  }
 0x297   :  { %4575 = vmatpush1.bf16.msra.mxu0 %v6577_v36  ;;  %v6647_v36 = vld [vmem:[#allocation10 + $0x858] ss:$12 sps:$4 sm:$0xff]  }
 0x298   :  { %4576 = vmatprep.subr.bf16.mxu0 %v6582_v37  ;;  %v6652_v37 = vld [vmem:[#allocation10 + $0x874] ss:$12 sps:$4 sm:$0xff]  }
 0x299   :  { %5759 = vmatpush3.bf16.msra.mxu1 %v6619_v38  ;;  %v6650_v38 = vld [vmem:[#allocation10 + $0x870] ss:$12 sps:$4 sm:$0xff]  }
 0x29b   :  { %4577 = vmatpush1.bf16.msra.mxu0 %v6580_v39  ;;  %v6655_v39 = vld [vmem:[#allocation10 + $0x88c] ss:$12 sps:$4 sm:$0xff]  }
 0x29c   :  { %4578 = vmatprep.subr.bf16.mxu0 %v6587_v41  ;;  %v6653_v41 = vld [vmem:[#allocation10 + $0x888] ss:$12 sps:$4 sm:$0xff]  }
 0x29f   :  { %4579 = vmatpush1.bf16.msra.mxu0 %v6585_v42  ;;  %v6658_v42 = vld [vmem:[#allocation10 + $0x8a4] ss:$12 sps:$4 sm:$0xff]  }
 0x2a0   :  { %4580 = vmatprep.subr.bf16.mxu0 %v6592_v6  ;;  %v6656_v6 = vld [vmem:[#allocation10 + $0x8a0] ss:$12 sps:$4 sm:$0xff]  }
 0x2a3   :  { %4581 = vmatpush1.bf16.msra.mxu0 %v6590_v47  ;;  %v6661_v47 = vld [vmem:[#allocation10 + $0x8bc] ss:$12 sps:$4 sm:$0xff]  }
 0x2a4   :  { %4582 = vmatprep.subr.bf16.mxu0 %v6597_v18  ;;  %v6659_v18 = vld [vmem:[#allocation10 + $0x8b8] ss:$12 sps:$4 sm:$0xff]  }
 0x2a7   :  { %4583 = vmatpush1.bf16.msra.mxu0 %v6595_v48  ;;  %v6664_v48 = vld [vmem:[#allocation10 + $0x8d4] ss:$12 sps:$4 sm:$0xff]  }
 0x2a8   :  { %4584 = vmatprep.subr.bf16.mxu0 %v6602_v50 }
 0x2ab   :  { %4585 = vmatpush1.bf16.msra.mxu0 %v6600_v53  ;;  %v6662_v53 = vld [vmem:[#allocation10 + $0x8d0] ss:$12 sps:$4 sm:$0xff]  }
 0x2ac   :  { %4586 = vmatprep.subr.bf16.mxu0 %v6607_v55 }
 0x2af   :  { %4587 = vmatpush1.bf16.msra.mxu0 %v6605_v56  ;;  %v2417_v60 = vpop.f32.mrb[12].mxu1  ;;  %v6667_v56 = vld [vmem:[#allocation10 + $0x8ec] ss:$12 sps:$4 sm:$0xff]  }
 0x2b0   :  { %v5786_v62 = vadd.f32 %v2417_v60, %v437_v49  ;;  %v2419_v0 = vpop.f32.mrb[13].mxu1  ;;  %4588 = vmatprep.subr.bf16.mxu0 %v6612_v58 }
 0x2b1   :  { %v5787_v2 = vadd.f32 %v2419_v0, %v441_v59  ;;  %v2421_v3 = vpop.f32.mrb[14].mxu1 }
 0x2b2   :  { %v2436_v4 = vmax.f32 %v5786_v62, 0.0  ;;  %v5788_v5 = vadd.f32 %v2421_v3, %v437_v49  ;;  %v2423_v43 = vpop.f32.mrb[15].mxu1  ;;  %v6665_v62 = vld [vmem:[#allocation10 + $0x8e8] ss:$12 sps:$4 sm:$0xff]  }
 0x2b3   :  { %v2437_v9 = vmax.f32 %v5787_v2, 0.0  ;;  %v5789_v10 = vadd.f32 %v2423_v43, %v441_v59  ;;  %4589 = vmatpush1.bf16.msra.mxu0 %v6610_v61 }
 0x2b4   :  { %v2448_v12 = vmax.f32 %v5788_v5, 0.0  ;;  %4590 = vmatprep.subr.bf16.mxu0 %v6617_v1 }
 0x2b5   :  { %v2449_v34 = vmax.f32 %v5789_v10, 0.0 }
 0x2b6   :  { %v7028_v63 = vpack.c.bf16 %v2448_v12, %v2436_v4 }
 0x2b7   :  { %v2467_v14 = vpack.c.bf16 %v2449_v34, %v2437_v9  ;;  %4591 = vmatpush1.bf16.msra.mxu0 %v6615_v11 }
 0x2b8   :  { %4603 = vmatprep.subr.bf16.mxu0 %v6622_v13 }
 0x2b9   :  { %4883 = vmatprep.mubr.bf16.mxu1 %v2467_v14 }
 0x2ba   :  { %4593 = vmatmul.mubr.bf16.vlgmr.msra.gmra.mrb[8].mxu0 %v7006_v51  ;;  %4884 = vmatmul.mubr.bf16.vlgmr.msra.gmra.mrb[36].mxu1 %v7028_v63  ;;  %v6635_v51 = vld [vmem:[#allocation10 + $0x7f8] ss:$12 sps:$4 sm:$0xff]  }
 0x2bb   :  { %4604 = vmatpush1.bf16.msra.mxu0 %v6620_v15  ;;  %4635 = vmatprep.mubr.bf16.mxu0 %v2467_v14 }
 0x2bc   :  { %4605 = vmatprep.subr.bf16.mxu0 %v6625_v7 }
 0x2bf   :  { %4606 = vmatpush1.bf16.msra.mxu0 %v6623_v16 }
 0x2c0   :  { %4607 = vmatprep.subr.bf16.mxu0 %v6628_v8 }
 0x2c3   :  { %4608 = vmatpush1.bf16.msra.mxu0 %v6626_v17 }
 0x2c4   :  { %4609 = vmatprep.subr.bf16.mxu0 %v6631_v19 }
 0x2c7   :  { %4610 = vmatpush1.bf16.msra.mxu0 %v6629_v52 }
 0x2c8   :  { %4611 = vmatprep.subr.bf16.mxu0 %v6634_v20 }
 0x2cb   :  { %4612 = vmatpush1.bf16.msra.mxu0 %v6632_v54 }
 0x2cc   :  { %4613 = vmatprep.subr.bf16.mxu0 %v6637_v21 }
 0x2cf   :  { %4614 = vmatpush1.bf16.msra.mxu0 %v6635_v51  ;;  %v5650_v57 = vpop.f32.mrb[16].mxu1  ;;  %v4945_v51 = vand.u32 127, %v394_v28 }
 0x2d0   :  { %v5651_v24 = vpop.f32.mrb[17].mxu1  ;;  %4615 = vmatprep.subr.bf16.mxu0 %v6640_v22  ;;  %v4940_v22 = vadd.s32 8, %v6954_v40 }
 0x2d1   :  { %v5652_v26 = vadd.f32 %v5651_v24, %v5650_v57  ;;  %v5653_v27 = vpop.f32.mrb[18].mxu1  ;;  %v4947_v57 = vadd.s32 256, %v4945_v51 }
 0x2d2   :  { %v5654_v29 = vpop.f32.mrb[19].mxu1  ;;  %v4949_v24 = vmul.u32 384, %v4940_v22 }
 0x2d3   :  { %4616 = vmatpush1.bf16.msra.mxu0 %v6638_v23  ;;  %v5655_v30 = vadd.f32 %v5654_v29, %v5653_v27  ;;  %v4948_v23 = vmul.u32 384, %v6954_v40 }
 0x2d4   :  { %4617 = vmatprep.subr.bf16.mxu0 %v6643_v25  ;;  %v4955_v27 = vadd.s32 %v4949_v24, %v4947_v57 }
 0x2d5   :  { %v4952_v25 = vadd.s32 %v4948_v23, %v4947_v57 }
 0x2d7   :  { %4618 = vmatpush1.bf16.msra.mxu0 %v6641_v31 }
 0x2d8   :  { %4619 = vmatprep.subr.bf16.mxu0 %v6646_v32 }
 0x2db   :  { %4620 = vmatpush1.bf16.msra.mxu0 %v6644_v33 }
 0x2dc   :  { %4621 = vmatprep.subr.bf16.mxu0 %v6649_v35 }
 0x2df   :  { %4622 = vmatpush1.bf16.msra.mxu0 %v6647_v36 }
 0x2e0   :  { %4623 = vmatprep.subr.bf16.mxu0 %v6652_v37 }
 0x2e3   :  { %4624 = vmatpush1.bf16.msra.mxu0 %v6650_v38 }
 0x2e4   :  { %4625 = vmatprep.subr.bf16.mxu0 %v6655_v39 }
 0x2e7   :  { %4626 = vmatpush1.bf16.msra.mxu0 %v6653_v41 }
 0x2e8   :  { %4627 = vmatprep.subr.bf16.mxu0 %v6658_v42 }
 0x2eb   :  { %4628 = vmatpush1.bf16.msra.mxu0 %v6656_v6 }
 0x2ec   :  { %4629 = vmatprep.subr.bf16.mxu0 %v6661_v47  ;;  %v4913_v47 = vld [vmem:[#allocation12] sm:$0x7] }
 0x2ef   :  { %4630 = vmatpush1.bf16.msra.mxu0 %v6659_v18  ;;  %v5672_v50 = vpop.f32.mrb[20].mxu1 }
 0x2f0   :  { %v5673_v55 = vpop.f32.mrb[21].mxu1  ;;  %4631 = vmatprep.subr.bf16.mxu0 %v6664_v48 }
 0x2f1   :  { %v5674_v49 = vadd.f32 %v5673_v55, %v5672_v50  ;;  %v5675_v58 = vpop.f32.mrb[22].mxu1 }
 0x2f2   :  { %v5676_v59 = vpop.f32.mrb[23].mxu1 }
 0x2f3   :  { %v4722_v60 = vadd.f32 %v5674_v49, %v5652_v26  ;;  %4632 = vmatpush1.bf16.msra.mxu0 %v6662_v53  ;;  %v5677_v61 = vadd.f32 %v5676_v59, %v5675_v58  ;;  %v4957_v26 = vstv %s4956_s4  ;;  %v4926_v49 = vrot.slane %v4913_v47, %v6987_v46 }
 0x2f4   :  { %4633 = vmatprep.subr.bf16.mxu0 %v6667_v56  ;;  %v4960_v29 = vxor.u32 %v4957_v26, %v4952_v25 }
 0x2f5   :  { %v4725_v0 = vadd.f32 %v5677_v61, %v5655_v30  ;;  %v4963_v30 = vxor.u32 %v4957_v26, %v4955_v27 }
 0x2f6   :  { %v4966_v31 = vshrl.u32 %v4960_v29, 16 }
 0x2f7   :  { %4634 = vmatpush1.bf16.msra.mxu0 %v6665_v62  ;;  %v4969_v32 = vshrl.u32 %v4963_v30, 16 }
 0x2f8   :  { %v4972_v33 = vxor.u32 %v4966_v31, %v4960_v29 }
 0x2f9   :  { %v4975_v35 = vxor.u32 %v4969_v32, %v4963_v30 }
 0x2fa   :  { %4636 = vmatmul.mubr.bf16.vlgmr.msra.gmra.mrb[8].mxu0 %v7028_v63  ;;  %v4978_v28 = vmul.u32 2146121005, %v4972_v33 }
 0x2fb   :  { %v4981_v36 = vmul.u32 2146121005, %v4975_v35 }
 0x2fc   :  { %v4984_v37 = vshrl.u32 %v4978_v28, 15 }
 0x2fd   :  { %v4987_v38 = vshrl.u32 %v4981_v36, 15 }
 0x2fe   :  { %v4990_v39 = vxor.u32 %v4984_v37, %v4978_v28  ;;  %v4918_v37 = vrot.slane %v4913_v47, %v6959_v44 }
 0x2ff   :  { %v4993_v40 = vxor.u32 %v4987_v38, %v4981_v36 }
 0x300   :  { %v4996_v41 = vmul.u32 2221713035, %v4990_v39  ;;  %v4922_v39 = vrot.slane %v4913_v47, %v6962_v45 }
 0x301   :  { %v4999_v42 = vmul.u32 2221713035, %v4993_v40 }
 0x302   :  { %v5002_v48 = vshrl.u32 %v4996_v41, 16 }
 0x303   :  { %v5005_v56 = vshrl.u32 %v4999_v42, 16 }
 0x305   :  { %v5011_v62 = vxor.u32 %v5005_v56, %v4999_v42 }
 0x307   :  { %vm5017_vm1 = vcmp.ge.u32.totalorder %v5011_v62, 858993459 }
 0x30f   :  { %v5694_v1 = vpop.f32.mrb[24].mxu1 }
 0x310   :  { %v5695_v2 = vpop.f32.mrb[25].mxu1 }
 0x311   :  { %v5696_v3 = vadd.f32 %v5695_v2, %v5694_v1  ;;  %v5697_v4 = vpop.f32.mrb[26].mxu1 }
 0x312   :  { %v5698_v5 = vpop.f32.mrb[27].mxu1 }
 0x313   :  { %v4763_v43 = vadd.f32 %v5696_v3, %v4722_v60  ;;  %v5699_v9 = vadd.f32 %v5698_v5, %v5697_v4  ;;  %v5008_v60 = vxor.u32 %v5002_v48, %v4996_v41 }
 0x315   :  { %v4766_v10 = vadd.f32 %v5699_v9, %v4725_v0  ;;  %vm5014_vm0 = vcmp.ge.u32.totalorder %v5008_v60, 858993459  ;;  %v4950_v9 = vadd.s32 %v4948_v23, %v4945_v51 }
 0x32f   :  { %v5716_v11 = vpop.f32.mrb[28].mxu1 }
 0x330   :  { %v5717_v12 = vpop.f32.mrb[29].mxu1 }
 0x331   :  { %v5718_v13 = vadd.f32 %v5717_v12, %v5716_v11  ;;  %v5719_v34 = vpop.f32.mrb[30].mxu1  ;;  %v4953_v11 = vadd.s32 %v4949_v24, %v4945_v51  ;;  %v4958_v12 = vxor.u32 %v4957_v26, %v4950_v9 }
 0x332   :  { %v5720_v14 = vpop.f32.mrb[31].mxu1 }
 0x333   :  { %v4804_v15 = vadd.f32 %v5718_v13, %v4763_v43  ;;  %v5721_v7 = vadd.f32 %v5720_v14, %v5719_v34  ;;  %v4946_v43 = vadd.s32 128, %v4945_v51  ;;  %v4961_v34 = vxor.u32 %v4957_v26, %v4953_v11 }
 0x335   :  { %v4807_v16 = vadd.f32 %v5721_v7, %v4766_v10  ;;  %v4951_v10 = vadd.s32 %v4948_v23, %v4946_v43  ;;  %v4954_v46 = vadd.s32 %v4949_v24, %v4946_v43 }
 0x337   :  { %v4959_v13 = vxor.u32 %v4957_v26, %v4951_v10  ;;  %v4962_v14 = vxor.u32 %v4957_v26, %v4954_v46 }
 0x339   :  { %v4965_v7 = vshrl.u32 %v4959_v13, 16 }
 0x34f   :  { %v5738_v8 = vpop.f32.mrb[32].mxu1 }
 0x350   :  { %v5739_v17 = vpop.f32.mrb[33].mxu1 }
 0x351   :  { %v5740_v19 = vadd.f32 %v5739_v17, %v5738_v8  ;;  %v5741_v63 = vpop.f32.mrb[34].mxu1  ;;  %v4968_v8 = vshrl.u32 %v4962_v14, 16 }
 0x352   :  { %v5742_v52 = vpop.f32.mrb[35].mxu1 }
 0x353   :  { %v4845_v20 = vadd.f32 %v5740_v19, %v4804_v15  ;;  %v5743_v54 = vadd.f32 %v5742_v52, %v5741_v63  ;;  %v4964_v15 = vshrl.u32 %v4958_v12, 16  ;;  %v4971_v19 = vxor.u32 %v4965_v7, %v4959_v13 }
 0x354   :  { %v4974_v52 = vxor.u32 %v4968_v8, %v4962_v14 }
 0x355   :  { %v4848_v21 = vadd.f32 %v5743_v54, %v4807_v16  ;;  %v4967_v16 = vshrl.u32 %v4961_v34, 16  ;;  %v4970_v17 = vxor.u32 %v4964_v15, %v4958_v12  ;;  %v4977_v54 = vmul.u32 2146121005, %v4971_v19 }
 0x356   :  { %v4980_v22 = vmul.u32 2146121005, %v4974_v52 }
 0x357   :  { %v4973_v63 = vxor.u32 %v4967_v16, %v4961_v34  ;;  %v4983_v23 = vshrl.u32 %v4977_v54, 15 }
 0x358   :  { %v4986_v24 = vshrl.u32 %v4980_v22, 15 }
 0x359   :  { %v4989_v27 = vxor.u32 %v4983_v23, %v4977_v54 }
 0x35a   :  { %v4992_v26 = vxor.u32 %v4986_v24, %v4980_v22 }
 0x35b   :  { %v4995_v31 = vmul.u32 2221713035, %v4989_v27 }
 0x35c   :  { %v4998_v33 = vmul.u32 2221713035, %v4992_v26 }
 0x35d   :  { %v5001_v28 = vshrl.u32 %v4995_v31, 16 }
 0x35e   :  { %v5004_v38 = vshrl.u32 %v4998_v33, 16 }
 0x38d   :  { %v5760_v6 = vpop.f32.mrb[36].mxu1 }
 0x38e   :  { %v5761_v18 = vpop.f32.mrb[37].mxu1 }
 0x38f   :  { %v5762_v50 = vadd.f32 %v5761_v18, %v5760_v6  ;;  %v5763_v53 = vpop.f32.mrb[38].mxu1  ;;  %v5007_v6 = vxor.u32 %v5001_v28, %v4995_v31 }
 0x390   :  { %v5764_v55 = vpop.f32.mrb[39].mxu1 }
 0x391   :  { %v4886_v58 = vadd.f32 %v5762_v50, %v4845_v20  ;;  %v5765_v59 = vadd.f32 %v5764_v55, %v5763_v53  ;;  %v4976_v20 = vmul.u32 2146121005, %v4970_v17  ;;  %v5010_v55 = vxor.u32 %v5004_v38, %v4998_v33 }
 0x392   :  { %vm5013_vm3 = vcmp.ge.u32.totalorder %v5007_v6, 858993459 }
 0x393   :  { %v4889_v61 = vadd.f32 %v5765_v59, %v4848_v21  ;;  %v4932_v0 = vadd.f32 %v4926_v49, %v4886_v58  ;;  %v4979_v21 = vmul.u32 2146121005, %v4973_v63  ;;  %v4982_v57 = vshrl.u32 %v4976_v20, 15 }
 0x394   :  { %vm5016_vm5 = vcmp.ge.u32.totalorder %v5010_v55, 858993459 }
 0x395   :  { %v5020_v1 = vmul.f32 1.25, %v4932_v0  ;;  %v4935_v2 = vadd.f32 %v4926_v49, %v4889_v61  ;;  %v4985_v51 = vshrl.u32 %v4979_v21, 15  ;;  %v4988_v25 = vxor.u32 %v4982_v57, %v4976_v20 }
 0x397   :  { %v5026_v3 = vsel %vm5014_vm0, %v5020_v1, 0.0  ;;  %v5023_v4 = vmul.f32 1.25, %v4935_v2  ;;  %v4991_v29 = vxor.u32 %v4985_v51, %v4979_v21  ;;  %v4994_v30 = vmul.u32 2221713035, %v4988_v25 }
 0x398   :  { %5032 = vst [vmem:[#allocation13 + $0x10] sm:$0xff] %v5026_v3 }
 0x399   :  { %v5029_v5 = vsel %vm5017_vm1, %v5023_v4, 0.0  ;;  %v4997_v32 = vmul.u32 2221713035, %v4991_v29  ;;  %v5000_v35 = vshrl.u32 %v4994_v30, 16 }
 0x39a   :  { %5035 = vst [vmem:[#allocation13 + $0x28] sm:$0xff] %v5029_v5 }
 0x39b   :  { %v5003_v36 = vshrl.u32 %v4997_v32, 16  ;;  %v5006_v41 = vxor.u32 %v5000_v35, %v4994_v30 }
 0x39d   :  { %v5009_v48 = vxor.u32 %v5003_v36, %v4997_v32  ;;  %vm5012_vm2 = vcmp.ge.u32.totalorder %v5006_v41, 858993459 }
 0x39f   :  { %vm5015_vm4 = vcmp.ge.u32.totalorder %v5009_v48, 858993459 }
 0x3cd   :  { %v4637_v40 = vpop.f32.mrb[8].mxu0 }
 0x3ce   :  { %v4639_v42 = vpop.f32.mrb[9].mxu0  ;;  %v4930_v50 = vadd.f32 %v4918_v37, %v4637_v40 }
 0x3cf   :  { %v4641_v18 = vpop.f32.mrb[10].mxu0  ;;  %v4931_v56 = vadd.f32 %v4922_v39, %v4639_v42 }
 0x3d0   :  { %v4643_v53 = vpop.f32.mrb[11].mxu0  ;;  %v5018_v49 = vmul.f32 1.25, %v4930_v50  ;;  %v4933_v58 = vadd.f32 %v4918_v37, %v4641_v18 }
 0x3d1   :  { %v5019_v44 = vmul.f32 1.25, %v4931_v56  ;;  %v4934_v59 = vadd.f32 %v4922_v39, %v4643_v53 }
 0x3d2   :  { %v5024_v45 = vsel %vm5012_vm2, %v5018_v49, 0.0  ;;  %v5021_v47 = vmul.f32 1.25, %v4933_v58 }
 0x3d3   :  { %5030 = vst [vmem:[#allocation13] sm:$0xff] %v5024_v45  ;;  %v5025_v60 = vsel %vm5013_vm3, %v5019_v44, 0.0  ;;  %v5022_v61 = vmul.f32 1.25, %v4934_v59 }
 0x3d4   :  { %5031 = vst [vmem:[#allocation13 + $0x8] sm:$0xff] %v5025_v60  ;;  %v5027_v62 = vsel %vm5015_vm4, %v5021_v47, 0.0 }
 0x3d5   :  { %5033 = vst [vmem:[#allocation13 + $0x18] sm:$0xff] %v5027_v62  ;;  %v5028_v0 = vsel %vm5016_vm5, %v5022_v61, 0.0 }
 0x3d6   :  { %5034 = vst [vmem:[#allocation13 + $0x20] sm:$0xff] %v5028_v0 }
 0x3d7   :  { %6793 = shalt.err (!%p6790_p2)
}
 0x3d8   :  { %s6794_s15 = scalar_lea.hbm %s7060_s6, 768 }
 0x3d9   :  { %p6795_p3 = scmp.ne.s32.totalorder %s7060_s6, %s6794_s15  ;;  %p6798_p4 = scmp.lt.u32.totalorder %s6794_s15, %s7060_s6 }
 0x3db   :  { %p6800_p5 = pnand %p6798_p4, %p6795_p3 }
 0x3dd   :  { %6803 = shalt.err (!%p6800_p5)
}
 0x3de   :  { %s6823_s20 = smov 384   ;;  %s6824_s21 = smov 24  }
 0x3df   :  { %5047 = dma.vmem_to_hbm [thread:$0]  %s5042_s10, 768, %s7060_s6, [#allocation6], %s6823_s20, %s6823_s20, %s6824_s21  }
 0x3e0   :  { %6810 = dma.done.wait [#allocation6], 768  }
 0x3e1   :  { %6811 = vsyncadd [#allocation6], 4294966528 }
 0x3e2   :  { %5051 = vsyncpa [#allocation5], 1 }
 0x3e3   :  { %5052 = vsyncpa [#allocation8], 1 }
 0x3e4   :  { %5053 = vsyncpa [#allocation11], 1 }
 0x3e5   :  { %5054 = vsyncpa [#allocation6], 1 }

</bundles_post_ra>
